<compile_context>
chip_gen: v7x
topology: tpu7x:2x2x1
jax: 0.10.0
libtpu: 0.0.40
codegen_flags: <defaults>
</compile_context>

<pallas_src>
from functools import partial

import numpy as np
import jax
import jax.numpy as jnp
from jax.experimental import pallas as pl
from jax.experimental.pallas import tpu as pltpu


# ----------------------------------------------------------------------------
# Wrapper-side preprocessing (tiny one-time XLA ops, all traceable).
# ----------------------------------------------------------------------------
def _stage1_im2col(x, B):
    """x: (N, H, W, Cin) NHWC -> (G, 2, Ho2*B, 2*Wo2*16*Cin), G = N // B.

    Phase-ordered im2col for Conv2d(k=4, s=2, p=1) with BOTH horizontal output
    phases (s = 0, 1) concatenated along the lane axis and the batch folded
    into the matmul row axis (row = u * B + b).
    Lane layout: s*(Wo2*16*Cin) + v*(16*Cin) + (ky*4+kx)*Cin + ci.
    """
    N, H, W, Cin = x.shape
    Ho, Wo = H // 2, W // 2
    Ho2, Wo2 = Ho // 2, Wo // 2
    G = N // B
    xp = jnp.pad(x, ((0, 0), (1, 1), (1, 1), (0, 0)))
    taps = []
    for ky in range(4):
        for kx in range(4):
            taps.append(xp[:, ky:ky + 2 * Ho:2, kx:kx + 2 * Wo:2, :])  # (N,Ho,Wo,Cin)
    m = jnp.stack(taps, axis=3)                       # (N, Ho, Wo, 16, Cin)
    m = m.reshape(N, Ho2, 2, Wo2, 2, 16, Cin)         # p = 2u + r, q = 2v + s
    m = m.reshape(G, B, Ho2, 2, Wo2, 2, 16, Cin)      # (g, b, u, r, v, s, tap, ci)
    m = m.transpose(0, 3, 2, 1, 5, 4, 6, 7)           # (g, r, u, b, s, v, tap, ci)
    return m.reshape(G, 2, Ho2 * B, 2 * Wo2 * 16 * Cin)


def _blockdiag(w2d, wd):
    """(Cin, Cout) -> (wd*Cin, wd*Cout) block diagonal (block index is outer)."""
    cin, cout = w2d.shape
    eye = jnp.eye(wd, dtype=w2d.dtype)
    return jnp.einsum("jk,io->jiko", eye, w2d).reshape(wd * cin, wd * cout)


def _tile_bias(b, wd):
    return jnp.tile(b, wd).reshape(1, wd * b.shape[0])


def _conv3_banded(w, Wo2):
    """w: (3, 3, Ci, Co) -> (3, Wo2*Ci, Wo2*Co), one banded weight per vertical tap.

    Horizontal taps (kx) and the column zero-padding of the 3x3/p=1 conv are
    folded into the weight: row = vin*Ci + ci, col = vout*Co + co, nonzero iff
    vin == vout + kx - 1 for some kx in [0, 3) with 0 <= vin < Wo2.
    """
    _, _, Ci, Co = w.shape
    ind = np.zeros((3, Wo2, Wo2), np.float32)
    for kx in range(3):
        for vout in range(Wo2):
            vin = vout + kx - 1
            if 0 <= vin < Wo2:
                ind[kx, vin, vout] = 1.0
    wb = jnp.einsum("xVQ,yxio->yViQo", jnp.asarray(ind, w.dtype), w)
    return wb.reshape(3, Wo2 * Ci, Wo2 * Co)


def _stage2_banded(w, Wo2):
    """w: (4, 4, C1, C2) -> (4, 2*Wo2*C1, Wo2*C2), one banded weight per vertical tap.

    Input lanes are the phase-split stage-1 output (lane = s*(Wo2*C1)+v*C1+c1);
    horizontal taps lx and the column zero-padding of the 4x4/s=2/p=1 conv are
    folded into the weight (input col for output q, tap lx is 2q+lx-1 = 2v+s).
    """
    _, _, C1, C2 = w.shape
    ind = np.zeros((4, 2, Wo2, Wo2), np.float32)
    for lx in range(4):
        s = (lx + 1) % 2
        dv = (lx - 1 - s) // 2
        for q in range(Wo2):
            v = q + dv
            if 0 <= v < Wo2:
                ind[lx, s, v, q] = 1.0
    wb = jnp.einsum("xSVQ,yxio->ySViQo", jnp.asarray(ind, w.dtype), w)
    return wb.reshape(4, 2 * Wo2 * C1, Wo2 * C2)


# ----------------------------------------------------------------------------
# Fused encoder kernel: one grid step per group of B batch images.
# Activation layout everywhere: 2-D, row = padded_row * B + b (zero ring rows
# at the top/bottom), lane = v * channels + c (exactly Wo2*C wide, offset 0).
# ----------------------------------------------------------------------------
def _encoder_kernel(*refs, n_res_block, Ho2, Wo2, B, C2):
    (m_ref, w1_ref, b1_ref, w2_ref, b2_ref, w3_ref, b3_ref) = refs[:7]
    res_refs = refs[7:7 + 4 * n_res_block]
    o_ref = refs[7 + 4 * n_res_block]
    ep_ref, pad_ref = refs[8 + 4 * n_res_block:]

    f32 = jnp.float32
    M = Ho2 * B
    top = B                        # first interior row
    bot = (Ho2 + 1) * B            # one past the last interior row

    # Zero only the vertical zero-pad ring rows (interiors are fully
    # overwritten every step).  Done EVERY grid step on purpose: with
    # "parallel" semantics each TensorCore owns a private scratch.
    ep_ref[:, 0:top, :] = jnp.zeros((2, top, ep_ref.shape[-1]), f32)
    ep_ref[:, bot:bot + B, :] = jnp.zeros((2, B, ep_ref.shape[-1]), f32)
    pad_ref[0:top, :] = jnp.zeros((top, pad_ref.shape[-1]), f32)
    pad_ref[bot:bot + B, :] = jnp.zeros((B, pad_ref.shape[-1]), f32)

    # ---- stage 1: Conv4x4 s2 p1 + ReLU.  One matmul per vertical output
    # phase r (both horizontal phases ride the lane axis); lane-dense store.
    for r in range(2):
        y = jnp.dot(m_ref[0, r], w1_ref[...], preferred_element_type=f32)
        ep_ref[r, top:bot, :] = jnp.maximum(y + b1_ref[...], 0.0)

    # ---- stage 2: Conv4x4 s2 p1 + ReLU.  4 banded matmuls (one per vertical
    # tap ly); horizontal taps + column padding live in w2_ref.
    acc = jnp.zeros((M, Wo2 * C2), f32)
    for ly, (r, off) in enumerate(((1, 0), (0, 1), (1, 1), (0, 2))):
        patch = ep_ref[r, off * B:(off + Ho2) * B, :]
        acc = acc + jnp.dot(patch, w2_ref[ly], preferred_element_type=f32)
    h = jnp.maximum(acc + b2_ref[...], 0.0)                 # (M, Wo2*C2)

    def conv3x3(w_ref_, bias_row, relu_out):
        # Input must already sit in pad_ref's interior rows.
        a = jnp.zeros((M, w_ref_.shape[-1]), f32)
        for ky in range(3):
            patch = pad_ref[ky * B:(ky + Ho2) * B, :]
            a = a + jnp.dot(patch, w_ref_[ky], preferred_element_type=f32)
        a = a + bias_row
        return jnp.maximum(a, 0.0) if relu_out else a

    # ---- stage 3: Conv3x3 p1 (no activation): 3 banded matmuls. ----
    pad_ref[top:bot, :] = h
    h = conv3x3(w3_ref, b3_ref[...], relu_out=False)

    # ---- ResBlocks: h = relu(h) + conv1x1(relu(conv3x3(relu(h)))) ----
    # (residual is relu(h): nn.ReLU(inplace=True) mutates the block's input)
    for k in range(n_res_block):
        rw3_ref, rb3_ref, rw1_ref, rb1_ref = res_refs[4 * k:4 * k + 4]
        hr = jnp.maximum(h, 0.0)
        pad_ref[top:bot, :] = hr
        t = conv3x3(rw3_ref, rb3_ref[...], relu_out=True)   # (M, Wo2*Cr)
        h = hr + jnp.dot(t, rw1_ref[...], preferred_element_type=f32) + rb1_ref[...]

    # ---- trailing ReLU; lane-dense, offset-0, 128-multiple store. ----
    o_ref[0] = jnp.maximum(h, 0.0).astype(o_ref.dtype)


# ----------------------------------------------------------------------------
# Public forward: NCHW in, NCHW out.
# ----------------------------------------------------------------------------
def encoder_forward(params, x_nchw, batch_per_step=None):
    x = jnp.transpose(x_nchw, (0, 2, 3, 1))           # NCHW -> NHWC
    N, H, W, Cin = x.shape
    assert H % 4 == 0 and W % 4 == 0, "stride==4 encoder needs H, W divisible by 4"
    C1 = params["w1"].shape[-1]                       # channel // 2
    C2 = params["w2"].shape[-1]                       # channel
    n_res_block = len(params["res"])
    Ho2, Wo2 = H // 4, W // 4

    # Fold B images per grid step so the matmul M dim is ~128-256 rows
    # (largest divisor of N under the cap); keep >= 2 grid steps when the
    # per-step M stays large so "parallel" engages both v7x TensorCores.
    if batch_per_step is None:
        cap = max(1, 256 // Ho2)
        B = max(d for d in range(1, N + 1) if N % d == 0 and d <= cap)
        G = N // B
        if G == 1 and N % 2 == 0 and Ho2 * (N // 2) >= 128:
            B, G = N // 2, 2
    else:
        B = batch_per_step
        G = N // B
    assert N % B == 0

    m = _stage1_im2col(x, B)                          # (G, 2, Ho2*B, 2*Wo2*16*Cin)

    # Weights expanded so the W dimension rides the lane axis; horizontal conv
    # taps + column zero-padding are folded into banded weights (wrapper-side).
    w1two = _blockdiag(_blockdiag(params["w1"].reshape(16 * Cin, C1), Wo2), 2)
    b1t = _tile_bias(params["b1"], 2 * Wo2)
    w2band = _stage2_banded(params["w2"], Wo2)
    b2t = _tile_bias(params["b2"], Wo2)
    w3band = _conv3_banded(params["w3"], Wo2)
    b3t = _tile_bias(params["b3"], Wo2)

    res_inputs = []
    for (rw3, rb3, rw1, rb1) in params["res"]:
        res_inputs += [_conv3_banded(rw3, Wo2), _tile_bias(rb3, Wo2),
                       _blockdiag(rw1, Wo2), _tile_bias(rb1, Wo2)]

    def const_spec(a):
        # Constant across the grid (weights/biases); could additionally be
        # single-buffered via pipeline_mode once weight VMEM becomes a concern.
        nd = a.ndim
        return pl.BlockSpec(a.shape, lambda g, _nd=nd: (0,) * _nd)

    in_specs = [pl.BlockSpec((1, 2, Ho2 * B, 2 * Wo2 * 16 * Cin),
                             lambda g: (g, 0, 0, 0))]
    in_specs += [const_spec(a) for a in (w1two, b1t, w2band, b2t, w3band, b3t)]
    in_specs += [const_spec(a) for a in res_inputs]

    kernel = partial(_encoder_kernel, n_res_block=n_res_block,
                     Ho2=Ho2, Wo2=Wo2, B=B, C2=C2)

    out2d = pl.pallas_call(
        kernel,
        out_shape=jax.ShapeDtypeStruct((G, Ho2 * B, Wo2 * C2), x.dtype),
        grid=(G,),
        in_specs=in_specs,
        out_specs=pl.BlockSpec((1, Ho2 * B, Wo2 * C2), lambda g: (g, 0, 0)),
        scratch_shapes=[
            pltpu.VMEM((2, (Ho2 + 2) * B, 2 * Wo2 * C1), jnp.float32),  # phase-split out1
            pltpu.VMEM(((Ho2 + 2) * B, Wo2 * C2), jnp.float32),         # 3x3 row-pad buffer
        ],
        compiler_params=pltpu.CompilerParams(dimension_semantics=("parallel",)),
    )(m, w1two, b1t, w2band, b2t, w3band, b3t, *res_inputs)

    # rows are (u, b) interleaved: (G, Ho2, B, Wo2, C2) -> NCHW
    out = out2d.reshape(G, Ho2, B, Wo2, C2).transpose(0, 2, 4, 1, 3)
    return out.reshape(N, C2, Ho2, Wo2)


# ----------------------------------------------------------------------------
# Parameter init (deterministic, synthetic, HWIO weight layout).
# ----------------------------------------------------------------------------
def init_params(key, in_channel, channel, n_res_block, n_res_channel):
    keys = iter(jax.random.split(key, 6 + 4 * n_res_block))

    def w(kh, kw, cin, cout):
        return 0.1 * jax.random.normal(next(keys), (kh, kw, cin, cout), jnp.float32)

    def bvec(c):
        return 0.1 * jax.random.normal(next(keys), (c,), jnp.float32)

    p = {
        "w1": w(4, 4, in_channel, channel // 2), "b1": bvec(channel // 2),
        "w2": w(4, 4, channel // 2, channel),    "b2": bvec(channel),
        "w3": w(3, 3, channel, channel),         "b3": bvec(channel),
        "res": [],
    }
    for _ in range(n_res_block):
        rw3 = w(3, 3, channel, n_res_channel)
        rb3 = bvec(n_res_channel)
        rw1 = w(1, 1, n_res_channel, channel)[0, 0]   # (n_res_channel, channel)
        rb1 = bvec(channel)
        p["res"].append((rw3, rb3, rw1, rb1))
    return p


# ----------------------------------------------------------------------------
# Pure-JAX reference (for validation).
# ----------------------------------------------------------------------------
def _ref_conv(x, w, b, stride, pad):
    y = jax.lax.conv_general_dilated(
        x, w, (stride, stride), [(pad, pad), (pad, pad)],
        dimension_numbers=("NHWC", "HWIO", "NHWC"),
        precision=jax.lax.Precision.HIGHEST)
    return y + b


def encoder_reference(params, x_nchw):
    x = jnp.transpose(x_nchw, (0, 2, 3, 1))
    h = jax.nn.relu(_ref_conv(x, params["w1"], params["b1"], 2, 1))
    h = jax.nn.relu(_ref_conv(h, params["w2"], params["b2"], 2, 1))
    h = _ref_conv(h, params["w3"], params["b3"], 1, 1)
    for (rw3, rb3, rw1, rb1) in params["res"]:
        hr = jax.nn.relu(h)
        t = jax.nn.relu(_ref_conv(hr, rw3, rb3, 1, 1))
        h = hr + jnp.einsum("nhwc,cd->nhwd", t, rw1,
                            precision=jax.lax.Precision.HIGHEST) + rb1
    h = jax.nn.relu(h)
    return jnp.transpose(h, (0, 3, 1, 2))


if __name__ == "__main__":
    key = jax.random.PRNGKey(0)
    k_x, k_p = jax.random.split(key)

    # Encoder(in_channel=4, channel=32, n_res_block=2, n_res_channel=16, stride=4)
    in_channel, channel = 4, 32
    n_res_block, n_res_channel, stride = 2, 16, 4
    N, H, W = 2, 16, 16

    x = jax.random.normal(k_x, (N, in_channel, H, W), jnp.float32)    # NCHW input
    params = init_params(k_p, in_channel, channel, n_res_block, n_res_channel)

    out = jax.jit(encoder_forward)(params, x)
    out = jax.block_until_ready(out)
    assert out.shape == (N, channel, H // stride, W // stride), out.shape

    ref = encoder_reference(params, x)
    err = float(jnp.max(jnp.abs(out - ref)))
    assert err < 1e-2, f"max abs error {err}"
    print("KERNEL_OK")
</pallas_src>

<mosaic_0001>
module attributes {stable_mosaic.version = 11 : i64} {
  func.func @_encoder_kernel(%arg0: i32, %arg1: memref<1x2x8x512xf32, #tpu.memory_space<vmem>>, %arg2: memref<512x128xf32, #tpu.memory_space<vmem>>, %arg3: memref<1x128xf32, #tpu.memory_space<vmem>>, %arg4: memref<4x128x128xf32, #tpu.memory_space<vmem>>, %arg5: memref<1x128xf32, #tpu.memory_space<vmem>>, %arg6: memref<3x128x128xf32, #tpu.memory_space<vmem>>, %arg7: memref<1x128xf32, #tpu.memory_space<vmem>>, %arg8: memref<3x128x64xf32, #tpu.memory_space<vmem>>, %arg9: memref<1x64xf32, #tpu.memory_space<vmem>>, %arg10: memref<64x128xf32, #tpu.memory_space<vmem>>, %arg11: memref<1x128xf32, #tpu.memory_space<vmem>>, %arg12: memref<3x128x64xf32, #tpu.memory_space<vmem>>, %arg13: memref<1x64xf32, #tpu.memory_space<vmem>>, %arg14: memref<64x128xf32, #tpu.memory_space<vmem>>, %arg15: memref<1x128xf32, #tpu.memory_space<vmem>>, %arg16: memref<1x8x128xf32, #tpu.memory_space<vmem>>, %arg17: memref<2x12x128xf32, #tpu.memory_space<vmem>>, %arg18: memref<12x128xf32, #tpu.memory_space<vmem>>) attributes {dimension_semantics = [#tpu.dimension_semantics<parallel>], iteration_bounds = array<i64: 1>, scalar_prefetch = 0 : i64, scratch_operands = 2 : i64, tpu.core_type = #tpu.core_type<tc>, window_params = [{transform_indices = @transform_0, window_bounds = array<i64: 1, 2, 8, 512>}, {pipeline_mode = #tpu.pipeline_mode<synchronous>, transform_indices = @transform_1, window_bounds = array<i64: 512, 128>}, {pipeline_mode = #tpu.pipeline_mode<synchronous>, transform_indices = @transform_2, window_bounds = array<i64: 1, 128>}, {pipeline_mode = #tpu.pipeline_mode<synchronous>, transform_indices = @transform_3, window_bounds = array<i64: 4, 128, 128>}, {pipeline_mode = #tpu.pipeline_mode<synchronous>, transform_indices = @transform_4, window_bounds = array<i64: 1, 128>}, {pipeline_mode = #tpu.pipeline_mode<synchronous>, transform_indices = @transform_5, window_bounds = array<i64: 3, 128, 128>}, {pipeline_mode = #tpu.pipeline_mode<synchronous>, transform_indices = @transform_6, window_bounds = array<i64: 1, 128>}, {pipeline_mode = #tpu.pipeline_mode<synchronous>, transform_indices = @transform_7, window_bounds = array<i64: 3, 128, 64>}, {pipeline_mode = #tpu.pipeline_mode<synchronous>, transform_indices = @transform_8, window_bounds = array<i64: 1, 64>}, {pipeline_mode = #tpu.pipeline_mode<synchronous>, transform_indices = @transform_9, window_bounds = array<i64: 64, 128>}, {pipeline_mode = #tpu.pipeline_mode<synchronous>, transform_indices = @transform_10, window_bounds = array<i64: 1, 128>}, {pipeline_mode = #tpu.pipeline_mode<synchronous>, transform_indices = @transform_11, window_bounds = array<i64: 3, 128, 64>}, {pipeline_mode = #tpu.pipeline_mode<synchronous>, transform_indices = @transform_12, window_bounds = array<i64: 1, 64>}, {pipeline_mode = #tpu.pipeline_mode<synchronous>, transform_indices = @transform_13, window_bounds = array<i64: 64, 128>}, {pipeline_mode = #tpu.pipeline_mode<synchronous>, transform_indices = @transform_14, window_bounds = array<i64: 1, 128>}, {transform_indices = @transform_15, window_bounds = array<i64: 1, 8, 128>}]} {
    %cst = arith.constant 0.000000e+00 : f32
    %0 = vector.broadcast %cst : f32 to vector<2x2x128xf32>
    %c0 = arith.constant 0 : index
    %c0_0 = arith.constant 0 : index
    %c0_1 = arith.constant 0 : index
    %1 = vector.load %arg17[%c0, %c0_0, %c0_1] : memref<2x12x128xf32, #tpu.memory_space<vmem>>, vector<2x2x128xf32>
    tpu.vector_store %arg17[%c0, %c0_0, %c0_1], %0 {strides = array<i32>} : memref<2x12x128xf32, #tpu.memory_space<vmem>>, vector<2x2x128xf32>,
    %cst_2 = arith.constant 0.000000e+00 : f32
    %2 = vector.broadcast %cst_2 : f32 to vector<2x2x128xf32>
    %c0_3 = arith.constant 0 : index
    %c10 = arith.constant 10 : index
    %c0_4 = arith.constant 0 : index
    %3 = vector.load %arg17[%c0_3, %c10, %c0_4] : memref<2x12x128xf32, #tpu.memory_space<vmem>>, vector<2x2x128xf32>
    tpu.vector_store %arg17[%c0_3, %c10, %c0_4], %2 {strides = array<i32>} : memref<2x12x128xf32, #tpu.memory_space<vmem>>, vector<2x2x128xf32>,
    %cst_5 = arith.constant 0.000000e+00 : f32
    %4 = vector.broadcast %cst_5 : f32 to vector<2x128xf32>
    %c0_6 = arith.constant 0 : index
    %c0_7 = arith.constant 0 : index
    %5 = vector.load %arg18[%c0_6, %c0_7] : memref<12x128xf32, #tpu.memory_space<vmem>>, vector<2x128xf32>
    tpu.vector_store %arg18[%c0_6, %c0_7], %4 {strides = array<i32>} : memref<12x128xf32, #tpu.memory_space<vmem>>, vector<2x128xf32>,
    %cst_8 = arith.constant 0.000000e+00 : f32
    %6 = vector.broadcast %cst_8 : f32 to vector<2x128xf32>
    %c10_9 = arith.constant 10 : index
    %c0_10 = arith.constant 0 : index
    %7 = vector.load %arg18[%c10_9, %c0_10] : memref<12x128xf32, #tpu.memory_space<vmem>>, vector<2x128xf32>
    tpu.vector_store %arg18[%c10_9, %c0_10], %6 {strides = array<i32>} : memref<12x128xf32, #tpu.memory_space<vmem>>, vector<2x128xf32>,
    %c0_11 = arith.constant 0 : index
    %c0_12 = arith.constant 0 : index
    %c0_13 = arith.constant 0 : index
    %c0_14 = arith.constant 0 : index
    %8 = vector.load %arg1[%c0_11, %c0_12, %c0_13, %c0_14] : memref<1x2x8x512xf32, #tpu.memory_space<vmem>>, vector<1x1x8x512xf32>
    %9 = vector.shape_cast %8 : vector<1x1x8x512xf32> to vector<8x512xf32>
    %c0_15 = arith.constant 0 : index
    %c0_16 = arith.constant 0 : index
    %10 = vector.load %arg2[%c0_15, %c0_16] : memref<512x128xf32, #tpu.memory_space<vmem>>, vector<512x128xf32>
    %cst_17 = arith.constant dense<0.000000e+00> : vector<8x128xf32>
    %11 = tpu.matmul %9, %10, %cst_17 {dimension_numbers = #tpu.dot_dimension_numbers<[1], [0], [0], [1], [0, 0, 1, 1], [], []>} : vector<8x512xf32>, vector<512x128xf32>, vector<8x128xf32> -> vector<8x128xf32>
    %c0_18 = arith.constant 0 : index
    %c0_19 = arith.constant 0 : index
    %12 = vector.load %arg3[%c0_18, %c0_19] : memref<1x128xf32, #tpu.memory_space<vmem>>, vector<1x128xf32>
    %13 = vector.broadcast %12 : vector<1x128xf32> to vector<8x128xf32>
    %14 = arith.addf %11, %13 : vector<8x128xf32>
    %cst_20 = arith.constant 0.000000e+00 : f32
    %15 = vector.broadcast %cst_20 : f32 to vector<8x128xf32>
    %16 = arith.maximumf %14, %15 : vector<8x128xf32>
    %c0_21 = arith.constant 0 : index
    %c2 = arith.constant 2 : index
    %c0_22 = arith.constant 0 : index
    %17 = vector.load %arg17[%c0_21, %c2, %c0_22] : memref<2x12x128xf32, #tpu.memory_space<vmem>>, vector<1x8x128xf32>
    %18 = vector.shape_cast %17 : vector<1x8x128xf32> to vector<8x128xf32>
    %19 = vector.shape_cast %16 : vector<8x128xf32> to vector<1x8x128xf32>
    tpu.vector_store %arg17[%c0_21, %c2, %c0_22], %19 {strides = array<i32>} : memref<2x12x128xf32, #tpu.memory_space<vmem>>, vector<1x8x128xf32>,
    %c0_23 = arith.constant 0 : index
    %c1 = arith.constant 1 : index
    %c0_24 = arith.constant 0 : index
    %c0_25 = arith.constant 0 : index
    %20 = vector.load %arg1[%c0_23, %c1, %c0_24, %c0_25] : memref<1x2x8x512xf32, #tpu.memory_space<vmem>>, vector<1x1x8x512xf32>
    %21 = vector.shape_cast %20 : vector<1x1x8x512xf32> to vector<8x512xf32>
    %c0_26 = arith.constant 0 : index
    %c0_27 = arith.constant 0 : index
    %22 = vector.load %arg2[%c0_26, %c0_27] : memref<512x128xf32, #tpu.memory_space<vmem>>, vector<512x128xf32>
    %cst_28 = arith.constant dense<0.000000e+00> : vector<8x128xf32>
    %23 = tpu.matmul %21, %22, %cst_28 {dimension_numbers = #tpu.dot_dimension_numbers<[1], [0], [0], [1], [0, 0, 1, 1], [], []>} : vector<8x512xf32>, vector<512x128xf32>, vector<8x128xf32> -> vector<8x128xf32>
    %c0_29 = arith.constant 0 : index
    %c0_30 = arith.constant 0 : index
    %24 = vector.load %arg3[%c0_29, %c0_30] : memref<1x128xf32, #tpu.memory_space<vmem>>, vector<1x128xf32>
    %25 = vector.broadcast %24 : vector<1x128xf32> to vector<8x128xf32>
    %26 = arith.addf %23, %25 : vector<8x128xf32>
    %cst_31 = arith.constant 0.000000e+00 : f32
    %27 = vector.broadcast %cst_31 : f32 to vector<8x128xf32>
    %28 = arith.maximumf %26, %27 : vector<8x128xf32>
    %c1_32 = arith.constant 1 : index
    %c2_33 = arith.constant 2 : index
    %c0_34 = arith.constant 0 : index
    %29 = vector.load %arg17[%c1_32, %c2_33, %c0_34] : memref<2x12x128xf32, #tpu.memory_space<vmem>>, vector<1x8x128xf32>
    %30 = vector.shape_cast %29 : vector<1x8x128xf32> to vector<8x128xf32>
    %31 = vector.shape_cast %28 : vector<8x128xf32> to vector<1x8x128xf32>
    tpu.vector_store %arg17[%c1_32, %c2_33, %c0_34], %31 {strides = array<i32>} : memref<2x12x128xf32, #tpu.memory_space<vmem>>, vector<1x8x128xf32>,
    %cst_35 = arith.constant 0.000000e+00 : f32
    %32 = vector.broadcast %cst_35 : f32 to vector<8x128xf32>
    %c1_36 = arith.constant 1 : index
    %c0_37 = arith.constant 0 : index
    %c0_38 = arith.constant 0 : index
    %33 = vector.load %arg17[%c1_36, %c0_37, %c0_38] : memref<2x12x128xf32, #tpu.memory_space<vmem>>, vector<1x8x128xf32>
    %34 = vector.shape_cast %33 : vector<1x8x128xf32> to vector<8x128xf32>
    %c0_39 = arith.constant 0 : index
    %c0_40 = arith.constant 0 : index
    %c0_41 = arith.constant 0 : index
    %35 = vector.load %arg4[%c0_39, %c0_40, %c0_41] : memref<4x128x128xf32, #tpu.memory_space<vmem>>, vector<1x128x128xf32>
    %36 = vector.shape_cast %35 : vector<1x128x128xf32> to vector<128x128xf32>
    %cst_42 = arith.constant dense<0.000000e+00> : vector<8x128xf32>
    %37 = tpu.matmul %34, %36, %cst_42 {dimension_numbers = #tpu.dot_dimension_numbers<[1], [0], [0], [1], [0, 0, 1, 1], [], []>} : vector<8x128xf32>, vector<128x128xf32>, vector<8x128xf32> -> vector<8x128xf32>
    %38 = arith.addf %32, %37 : vector<8x128xf32>
    %c0_43 = arith.constant 0 : index
    %c2_44 = arith.constant 2 : index
    %c0_45 = arith.constant 0 : index
    %39 = vector.load %arg17[%c0_43, %c2_44, %c0_45] : memref<2x12x128xf32, #tpu.memory_space<vmem>>, vector<1x8x128xf32>
    %40 = vector.shape_cast %39 : vector<1x8x128xf32> to vector<8x128xf32>
    %c1_46 = arith.constant 1 : index
    %c0_47 = arith.constant 0 : index
    %c0_48 = arith.constant 0 : index
    %41 = vector.load %arg4[%c1_46, %c0_47, %c0_48] : memref<4x128x128xf32, #tpu.memory_space<vmem>>, vector<1x128x128xf32>
    %42 = vector.shape_cast %41 : vector<1x128x128xf32> to vector<128x128xf32>
    %cst_49 = arith.constant dense<0.000000e+00> : vector<8x128xf32>
    %43 = tpu.matmul %40, %42, %cst_49 {dimension_numbers = #tpu.dot_dimension_numbers<[1], [0], [0], [1], [0, 0, 1, 1], [], []>} : vector<8x128xf32>, vector<128x128xf32>, vector<8x128xf32> -> vector<8x128xf32>
    %44 = arith.addf %38, %43 : vector<8x128xf32>
    %c1_50 = arith.constant 1 : index
    %c2_51 = arith.constant 2 : index
    %c0_52 = arith.constant 0 : index
    %45 = vector.load %arg17[%c1_50, %c2_51, %c0_52] : memref<2x12x128xf32, #tpu.memory_space<vmem>>, vector<1x8x128xf32>
    %46 = vector.shape_cast %45 : vector<1x8x128xf32> to vector<8x128xf32>
    %c2_53 = arith.constant 2 : index
    %c0_54 = arith.constant 0 : index
    %c0_55 = arith.constant 0 : index
    %47 = vector.load %arg4[%c2_53, %c0_54, %c0_55] : memref<4x128x128xf32, #tpu.memory_space<vmem>>, vector<1x128x128xf32>
    %48 = vector.shape_cast %47 : vector<1x128x128xf32> to vector<128x128xf32>
    %cst_56 = arith.constant dense<0.000000e+00> : vector<8x128xf32>
    %49 = tpu.matmul %46, %48, %cst_56 {dimension_numbers = #tpu.dot_dimension_numbers<[1], [0], [0], [1], [0, 0, 1, 1], [], []>} : vector<8x128xf32>, vector<128x128xf32>, vector<8x128xf32> -> vector<8x128xf32>
    %50 = arith.addf %44, %49 : vector<8x128xf32>
    %c0_57 = arith.constant 0 : index
    %c4 = arith.constant 4 : index
    %c0_58 = arith.constant 0 : index
    %51 = vector.load %arg17[%c0_57, %c4, %c0_58] : memref<2x12x128xf32, #tpu.memory_space<vmem>>, vector<1x8x128xf32>
    %52 = vector.shape_cast %51 : vector<1x8x128xf32> to vector<8x128xf32>
    %c3 = arith.constant 3 : index
    %c0_59 = arith.constant 0 : index
    %c0_60 = arith.constant 0 : index
    %53 = vector.load %arg4[%c3, %c0_59, %c0_60] : memref<4x128x128xf32, #tpu.memory_space<vmem>>, vector<1x128x128xf32>
    %54 = vector.shape_cast %53 : vector<1x128x128xf32> to vector<128x128xf32>
    %cst_61 = arith.constant dense<0.000000e+00> : vector<8x128xf32>
    %55 = tpu.matmul %52, %54, %cst_61 {dimension_numbers = #tpu.dot_dimension_numbers<[1], [0], [0], [1], [0, 0, 1, 1], [], []>} : vector<8x128xf32>, vector<128x128xf32>, vector<8x128xf32> -> vector<8x128xf32>
    %56 = arith.addf %50, %55 : vector<8x128xf32>
    %c0_62 = arith.constant 0 : index
    %c0_63 = arith.constant 0 : index
    %57 = vector.load %arg5[%c0_62, %c0_63] : memref<1x128xf32, #tpu.memory_space<vmem>>, vector<1x128xf32>
    %58 = vector.broadcast %57 : vector<1x128xf32> to vector<8x128xf32>
    %59 = arith.addf %56, %58 : vector<8x128xf32>
    %cst_64 = arith.constant 0.000000e+00 : f32
    %60 = vector.broadcast %cst_64 : f32 to vector<8x128xf32>
    %61 = arith.maximumf %59, %60 : vector<8x128xf32>
    %c2_65 = arith.constant 2 : index
    %c0_66 = arith.constant 0 : index
    %62 = vector.load %arg18[%c2_65, %c0_66] : memref<12x128xf32, #tpu.memory_space<vmem>>, vector<8x128xf32>
    tpu.vector_store %arg18[%c2_65, %c0_66], %61 {strides = array<i32>} : memref<12x128xf32, #tpu.memory_space<vmem>>, vector<8x128xf32>,
    %c0_67 = arith.constant 0 : index
    %c0_68 = arith.constant 0 : index
    %63 = vector.load %arg7[%c0_67, %c0_68] : memref<1x128xf32, #tpu.memory_space<vmem>>, vector<1x128xf32>
    %cst_69 = arith.constant 0.000000e+00 : f32
    %64 = vector.broadcast %cst_69 : f32 to vector<8x128xf32>
    %c0_70 = arith.constant 0 : index
    %c0_71 = arith.constant 0 : index
    %65 = vector.load %arg18[%c0_70, %c0_71] : memref<12x128xf32, #tpu.memory_space<vmem>>, vector<8x128xf32>
    %c0_72 = arith.constant 0 : index
    %c0_73 = arith.constant 0 : index
    %c0_74 = arith.constant 0 : index
    %66 = vector.load %arg6[%c0_72, %c0_73, %c0_74] : memref<3x128x128xf32, #tpu.memory_space<vmem>>, vector<1x128x128xf32>
    %67 = vector.shape_cast %66 : vector<1x128x128xf32> to vector<128x128xf32>
    %cst_75 = arith.constant dense<0.000000e+00> : vector<8x128xf32>
    %68 = tpu.matmul %65, %67, %cst_75 {dimension_numbers = #tpu.dot_dimension_numbers<[1], [0], [0], [1], [0, 0, 1, 1], [], []>} : vector<8x128xf32>, vector<128x128xf32>, vector<8x128xf32> -> vector<8x128xf32>
    %69 = arith.addf %64, %68 : vector<8x128xf32>
    %c2_76 = arith.constant 2 : index
    %c0_77 = arith.constant 0 : index
    %70 = vector.load %arg18[%c2_76, %c0_77] : memref<12x128xf32, #tpu.memory_space<vmem>>, vector<8x128xf32>
    %c1_78 = arith.constant 1 : index
    %c0_79 = arith.constant 0 : index
    %c0_80 = arith.constant 0 : index
    %71 = vector.load %arg6[%c1_78, %c0_79, %c0_80] : memref<3x128x128xf32, #tpu.memory_space<vmem>>, vector<1x128x128xf32>
    %72 = vector.shape_cast %71 : vector<1x128x128xf32> to vector<128x128xf32>
    %cst_81 = arith.constant dense<0.000000e+00> : vector<8x128xf32>
    %73 = tpu.matmul %70, %72, %cst_81 {dimension_numbers = #tpu.dot_dimension_numbers<[1], [0], [0], [1], [0, 0, 1, 1], [], []>} : vector<8x128xf32>, vector<128x128xf32>, vector<8x128xf32> -> vector<8x128xf32>
    %74 = arith.addf %69, %73 : vector<8x128xf32>
    %c4_82 = arith.constant 4 : index
    %c0_83 = arith.constant 0 : index
    %75 = vector.load %arg18[%c4_82, %c0_83] : memref<12x128xf32, #tpu.memory_space<vmem>>, vector<8x128xf32>
    %c2_84 = arith.constant 2 : index
    %c0_85 = arith.constant 0 : index
    %c0_86 = arith.constant 0 : index
    %76 = vector.load %arg6[%c2_84, %c0_85, %c0_86] : memref<3x128x128xf32, #tpu.memory_space<vmem>>, vector<1x128x128xf32>
    %77 = vector.shape_cast %76 : vector<1x128x128xf32> to vector<128x128xf32>
    %cst_87 = arith.constant dense<0.000000e+00> : vector<8x128xf32>
    %78 = tpu.matmul %75, %77, %cst_87 {dimension_numbers = #tpu.dot_dimension_numbers<[1], [0], [0], [1], [0, 0, 1, 1], [], []>} : vector<8x128xf32>, vector<128x128xf32>, vector<8x128xf32> -> vector<8x128xf32>
    %79 = arith.addf %74, %78 : vector<8x128xf32>
    %80 = vector.broadcast %63 : vector<1x128xf32> to vector<8x128xf32>
    %81 = arith.addf %79, %80 : vector<8x128xf32>
    %cst_88 = arith.constant 0.000000e+00 : f32
    %82 = vector.broadcast %cst_88 : f32 to vector<8x128xf32>
    %83 = arith.maximumf %81, %82 : vector<8x128xf32>
    %c2_89 = arith.constant 2 : index
    %c0_90 = arith.constant 0 : index
    %84 = vector.load %arg18[%c2_89, %c0_90] : memref<12x128xf32, #tpu.memory_space<vmem>>, vector<8x128xf32>
    tpu.vector_store %arg18[%c2_89, %c0_90], %83 {strides = array<i32>} : memref<12x128xf32, #tpu.memory_space<vmem>>, vector<8x128xf32>,
    %c0_91 = arith.constant 0 : index
    %c0_92 = arith.constant 0 : index
    %85 = vector.load %arg9[%c0_91, %c0_92] : memref<1x64xf32, #tpu.memory_space<vmem>>, vector<1x64xf32>
    %cst_93 = arith.constant 0.000000e+00 : f32
    %86 = vector.broadcast %cst_93 : f32 to vector<8x64xf32>
    %c0_94 = arith.constant 0 : index
    %c0_95 = arith.constant 0 : index
    %87 = vector.load %arg18[%c0_94, %c0_95] : memref<12x128xf32, #tpu.memory_space<vmem>>, vector<8x128xf32>
    %c0_96 = arith.constant 0 : index
    %c0_97 = arith.constant 0 : index
    %c0_98 = arith.constant 0 : index
    %88 = vector.load %arg8[%c0_96, %c0_97, %c0_98] : memref<3x128x64xf32, #tpu.memory_space<vmem>>, vector<1x128x64xf32>
    %89 = vector.shape_cast %88 : vector<1x128x64xf32> to vector<128x64xf32>
    %cst_99 = arith.constant dense<0.000000e+00> : vector<8x64xf32>
    %90 = tpu.matmul %87, %89, %cst_99 {dimension_numbers = #tpu.dot_dimension_numbers<[1], [0], [0], [1], [0, 0, 1, 1], [], []>} : vector<8x128xf32>, vector<128x64xf32>, vector<8x64xf32> -> vector<8x64xf32>
    %91 = arith.addf %86, %90 : vector<8x64xf32>
    %c2_100 = arith.constant 2 : index
    %c0_101 = arith.constant 0 : index
    %92 = vector.load %arg18[%c2_100, %c0_101] : memref<12x128xf32, #tpu.memory_space<vmem>>, vector<8x128xf32>
    %c1_102 = arith.constant 1 : index
    %c0_103 = arith.constant 0 : index
    %c0_104 = arith.constant 0 : index
    %93 = vector.load %arg8[%c1_102, %c0_103, %c0_104] : memref<3x128x64xf32, #tpu.memory_space<vmem>>, vector<1x128x64xf32>
    %94 = vector.shape_cast %93 : vector<1x128x64xf32> to vector<128x64xf32>
    %cst_105 = arith.constant dense<0.000000e+00> : vector<8x64xf32>
    %95 = tpu.matmul %92, %94, %cst_105 {dimension_numbers = #tpu.dot_dimension_numbers<[1], [0], [0], [1], [0, 0, 1, 1], [], []>} : vector<8x128xf32>, vector<128x64xf32>, vector<8x64xf32> -> vector<8x64xf32>
    %96 = arith.addf %91, %95 : vector<8x64xf32>
    %c4_106 = arith.constant 4 : index
    %c0_107 = arith.constant 0 : index
    %97 = vector.load %arg18[%c4_106, %c0_107] : memref<12x128xf32, #tpu.memory_space<vmem>>, vector<8x128xf32>
    %c2_108 = arith.constant 2 : index
    %c0_109 = arith.constant 0 : index
    %c0_110 = arith.constant 0 : index
    %98 = vector.load %arg8[%c2_108, %c0_109, %c0_110] : memref<3x128x64xf32, #tpu.memory_space<vmem>>, vector<1x128x64xf32>
    %99 = vector.shape_cast %98 : vector<1x128x64xf32> to vector<128x64xf32>
    %cst_111 = arith.constant dense<0.000000e+00> : vector<8x64xf32>
    %100 = tpu.matmul %97, %99, %cst_111 {dimension_numbers = #tpu.dot_dimension_numbers<[1], [0], [0], [1], [0, 0, 1, 1], [], []>} : vector<8x128xf32>, vector<128x64xf32>, vector<8x64xf32> -> vector<8x64xf32>
    %101 = arith.addf %96, %100 : vector<8x64xf32>
    %102 = vector.broadcast %85 : vector<1x64xf32> to vector<8x64xf32>
    %103 = arith.addf %101, %102 : vector<8x64xf32>
    %cst_112 = arith.constant 0.000000e+00 : f32
    %104 = vector.broadcast %cst_112 : f32 to vector<8x64xf32>
    %105 = arith.maximumf %103, %104 : vector<8x64xf32>
    %c0_113 = arith.constant 0 : index
    %c0_114 = arith.constant 0 : index
    %106 = vector.load %arg10[%c0_113, %c0_114] : memref<64x128xf32, #tpu.memory_space<vmem>>, vector<64x128xf32>
    %cst_115 = arith.constant dense<0.000000e+00> : vector<8x128xf32>
    %107 = tpu.matmul %105, %106, %cst_115 {dimension_numbers = #tpu.dot_dimension_numbers<[1], [0], [0], [1], [0, 0, 1, 1], [], []>} : vector<8x64xf32>, vector<64x128xf32>, vector<8x128xf32> -> vector<8x128xf32>
    %108 = arith.addf %83, %107 : vector<8x128xf32>
    %c0_116 = arith.constant 0 : index
    %c0_117 = arith.constant 0 : index
    %109 = vector.load %arg11[%c0_116, %c0_117] : memref<1x128xf32, #tpu.memory_space<vmem>>, vector<1x128xf32>
    %110 = vector.broadcast %109 : vector<1x128xf32> to vector<8x128xf32>
    %111 = arith.addf %108, %110 : vector<8x128xf32>
    %cst_118 = arith.constant 0.000000e+00 : f32
    %112 = vector.broadcast %cst_118 : f32 to vector<8x128xf32>
    %113 = arith.maximumf %111, %112 : vector<8x128xf32>
    %c2_119 = arith.constant 2 : index
    %c0_120 = arith.constant 0 : index
    %114 = vector.load %arg18[%c2_119, %c0_120] : memref<12x128xf32, #tpu.memory_space<vmem>>, vector<8x128xf32>
    tpu.vector_store %arg18[%c2_119, %c0_120], %113 {strides = array<i32>} : memref<12x128xf32, #tpu.memory_space<vmem>>, vector<8x128xf32>,
    %c0_121 = arith.constant 0 : index
    %c0_122 = arith.constant 0 : index
    %115 = vector.load %arg13[%c0_121, %c0_122] : memref<1x64xf32, #tpu.memory_space<vmem>>, vector<1x64xf32>
    %cst_123 = arith.constant 0.000000e+00 : f32
    %116 = vector.broadcast %cst_123 : f32 to vector<8x64xf32>
    %c0_124 = arith.constant 0 : index
    %c0_125 = arith.constant 0 : index
    %117 = vector.load %arg18[%c0_124, %c0_125] : memref<12x128xf32, #tpu.memory_space<vmem>>, vector<8x128xf32>
    %c0_126 = arith.constant 0 : index
    %c0_127 = arith.constant 0 : index
    %c0_128 = arith.constant 0 : index
    %118 = vector.load %arg12[%c0_126, %c0_127, %c0_128] : memref<3x128x64xf32, #tpu.memory_space<vmem>>, vector<1x128x64xf32>
    %119 = vector.shape_cast %118 : vector<1x128x64xf32> to vector<128x64xf32>
    %cst_129 = arith.constant dense<0.000000e+00> : vector<8x64xf32>
    %120 = tpu.matmul %117, %119, %cst_129 {dimension_numbers = #tpu.dot_dimension_numbers<[1], [0], [0], [1], [0, 0, 1, 1], [], []>} : vector<8x128xf32>, vector<128x64xf32>, vector<8x64xf32> -> vector<8x64xf32>
    %121 = arith.addf %116, %120 : vector<8x64xf32>
    %c2_130 = arith.constant 2 : index
    %c0_131 = arith.constant 0 : index
    %122 = vector.load %arg18[%c2_130, %c0_131] : memref<12x128xf32, #tpu.memory_space<vmem>>, vector<8x128xf32>
    %c1_132 = arith.constant 1 : index
    %c0_133 = arith.constant 0 : index
    %c0_134 = arith.constant 0 : index
    %123 = vector.load %arg12[%c1_132, %c0_133, %c0_134] : memref<3x128x64xf32, #tpu.memory_space<vmem>>, vector<1x128x64xf32>
    %124 = vector.shape_cast %123 : vector<1x128x64xf32> to vector<128x64xf32>
    %cst_135 = arith.constant dense<0.000000e+00> : vector<8x64xf32>
    %125 = tpu.matmul %122, %124, %cst_135 {dimension_numbers = #tpu.dot_dimension_numbers<[1], [0], [0], [1], [0, 0, 1, 1], [], []>} : vector<8x128xf32>, vector<128x64xf32>, vector<8x64xf32> -> vector<8x64xf32>
    %126 = arith.addf %121, %125 : vector<8x64xf32>
    %c4_136 = arith.constant 4 : index
    %c0_137 = arith.constant 0 : index
    %127 = vector.load %arg18[%c4_136, %c0_137] : memref<12x128xf32, #tpu.memory_space<vmem>>, vector<8x128xf32>
    %c2_138 = arith.constant 2 : index
    %c0_139 = arith.constant 0 : index
    %c0_140 = arith.constant 0 : index
    %128 = vector.load %arg12[%c2_138, %c0_139, %c0_140] : memref<3x128x64xf32, #tpu.memory_space<vmem>>, vector<1x128x64xf32>
    %129 = vector.shape_cast %128 : vector<1x128x64xf32> to vector<128x64xf32>
    %cst_141 = arith.constant dense<0.000000e+00> : vector<8x64xf32>
    %130 = tpu.matmul %127, %129, %cst_141 {dimension_numbers = #tpu.dot_dimension_numbers<[1], [0], [0], [1], [0, 0, 1, 1], [], []>} : vector<8x128xf32>, vector<128x64xf32>, vector<8x64xf32> -> vector<8x64xf32>
    %131 = arith.addf %126, %130 : vector<8x64xf32>
    %132 = vector.broadcast %115 : vector<1x64xf32> to vector<8x64xf32>
    %133 = arith.addf %131, %132 : vector<8x64xf32>
    %cst_142 = arith.constant 0.000000e+00 : f32
    %134 = vector.broadcast %cst_142 : f32 to vector<8x64xf32>
    %135 = arith.maximumf %133, %134 : vector<8x64xf32>
    %c0_143 = arith.constant 0 : index
    %c0_144 = arith.constant 0 : index
    %136 = vector.load %arg14[%c0_143, %c0_144] : memref<64x128xf32, #tpu.memory_space<vmem>>, vector<64x128xf32>
    %cst_145 = arith.constant dense<0.000000e+00> : vector<8x128xf32>
    %137 = tpu.matmul %135, %136, %cst_145 {dimension_numbers = #tpu.dot_dimension_numbers<[1], [0], [0], [1], [0, 0, 1, 1], [], []>} : vector<8x64xf32>, vector<64x128xf32>, vector<8x128xf32> -> vector<8x128xf32>
    %138 = arith.addf %113, %137 : vector<8x128xf32>
    %c0_146 = arith.constant 0 : index
    %c0_147 = arith.constant 0 : index
    %139 = vector.load %arg15[%c0_146, %c0_147] : memref<1x128xf32, #tpu.memory_space<vmem>>, vector<1x128xf32>
    %140 = vector.broadcast %139 : vector<1x128xf32> to vector<8x128xf32>
    %141 = arith.addf %138, %140 : vector<8x128xf32>
    %cst_148 = arith.constant 0.000000e+00 : f32
    %142 = vector.broadcast %cst_148 : f32 to vector<8x128xf32>
    %143 = arith.maximumf %141, %142 : vector<8x128xf32>
    %c0_149 = arith.constant 0 : index
    %c0_150 = arith.constant 0 : index
    %c0_151 = arith.constant 0 : index
    %144 = vector.load %arg16[%c0_149, %c0_150, %c0_151] : memref<1x8x128xf32, #tpu.memory_space<vmem>>, vector<1x8x128xf32>
    %145 = vector.shape_cast %144 : vector<1x8x128xf32> to vector<8x128xf32>
    %146 = vector.shape_cast %143 : vector<8x128xf32> to vector<1x8x128xf32>
    tpu.vector_store %arg16[%c0_149, %c0_150, %c0_151], %146 {strides = array<i32>} : memref<1x8x128xf32, #tpu.memory_space<vmem>>, vector<1x8x128xf32>,
    return
  }
  func.func @transform_0(%arg0: i32) -> (i32, i32, i32, i32) {
    %c0_i32 = arith.constant 0 : i32
    %c0_i32_0 = arith.constant 0 : i32
    %c0_i32_1 = arith.constant 0 : i32
    %c0_i32_2 = arith.constant 0 : i32
    return %arg0, %c0_i32, %c0_i32_0, %c0_i32_1 : i32, i32, i32, i32
  }
  func.func @transform_1(%arg0: i32) -> (i32, i32) {
    %c0_i32 = arith.constant 0 : i32
    %c0_i32_0 = arith.constant 0 : i32
    %c0_i32_1 = arith.constant 0 : i32
    return %c0_i32, %c0_i32_0 : i32, i32
  }
  func.func @transform_2(%arg0: i32) -> (i32, i32) {
    %c0_i32 = arith.constant 0 : i32
    %c0_i32_0 = arith.constant 0 : i32
    %c0_i32_1 = arith.constant 0 : i32
    return %c0_i32, %c0_i32_0 : i32, i32
  }
  func.func @transform_3(%arg0: i32) -> (i32, i32, i32) {
    %c0_i32 = arith.constant 0 : i32
    %c0_i32_0 = arith.constant 0 : i32
    %c0_i32_1 = arith.constant 0 : i32
    %c0_i32_2 = arith.constant 0 : i32
    return %c0_i32, %c0_i32_0, %c0_i32_1 : i32, i32, i32
  }
  func.func @transform_4(%arg0: i32) -> (i32, i32) {
    %c0_i32 = arith.constant 0 : i32
    %c0_i32_0 = arith.constant 0 : i32
    %c0_i32_1 = arith.constant 0 : i32
    return %c0_i32, %c0_i32_0 : i32, i32
  }
  func.func @transform_5(%arg0: i32) -> (i32, i32, i32) {
    %c0_i32 = arith.constant 0 : i32
    %c0_i32_0 = arith.constant 0 : i32
    %c0_i32_1 = arith.constant 0 : i32
    %c0_i32_2 = arith.constant 0 : i32
    return %c0_i32, %c0_i32_0, %c0_i32_1 : i32, i32, i32
  }
  func.func @transform_6(%arg0: i32) -> (i32, i32) {
    %c0_i32 = arith.constant 0 : i32
    %c0_i32_0 = arith.constant 0 : i32
    %c0_i32_1 = arith.constant 0 : i32
    return %c0_i32, %c0_i32_0 : i32, i32
  }
  func.func @transform_7(%arg0: i32) -> (i32, i32, i32) {
    %c0_i32 = arith.constant 0 : i32
    %c0_i32_0 = arith.constant 0 : i32
    %c0_i32_1 = arith.constant 0 : i32
    %c0_i32_2 = arith.constant 0 : i32
    return %c0_i32, %c0_i32_0, %c0_i32_1 : i32, i32, i32
  }
  func.func @transform_8(%arg0: i32) -> (i32, i32) {
    %c0_i32 = arith.constant 0 : i32
    %c0_i32_0 = arith.constant 0 : i32
    %c0_i32_1 = arith.constant 0 : i32
    return %c0_i32, %c0_i32_0 : i32, i32
  }
  func.func @transform_9(%arg0: i32) -> (i32, i32) {
    %c0_i32 = arith.constant 0 : i32
    %c0_i32_0 = arith.constant 0 : i32
    %c0_i32_1 = arith.constant 0 : i32
    return %c0_i32, %c0_i32_0 : i32, i32
  }
  func.func @transform_10(%arg0: i32) -> (i32, i32) {
    %c0_i32 = arith.constant 0 : i32
    %c0_i32_0 = arith.constant 0 : i32
    %c0_i32_1 = arith.constant 0 : i32
    return %c0_i32, %c0_i32_0 : i32, i32
  }
  func.func @transform_11(%arg0: i32) -> (i32, i32, i32) {
    %c0_i32 = arith.constant 0 : i32
    %c0_i32_0 = arith.constant 0 : i32
    %c0_i32_1 = arith.constant 0 : i32
    %c0_i32_2 = arith.constant 0 : i32
    return %c0_i32, %c0_i32_0, %c0_i32_1 : i32, i32, i32
  }
  func.func @transform_12(%arg0: i32) -> (i32, i32) {
    %c0_i32 = arith.constant 0 : i32
    %c0_i32_0 = arith.constant 0 : i32
    %c0_i32_1 = arith.constant 0 : i32
    return %c0_i32, %c0_i32_0 : i32, i32
  }
  func.func @transform_13(%arg0: i32) -> (i32, i32) {
    %c0_i32 = arith.constant 0 : i32
    %c0_i32_0 = arith.constant 0 : i32
    %c0_i32_1 = arith.constant 0 : i32
    return %c0_i32, %c0_i32_0 : i32, i32
  }
  func.func @transform_14(%arg0: i32) -> (i32, i32) {
    %c0_i32 = arith.constant 0 : i32
    %c0_i32_0 = arith.constant 0 : i32
    %c0_i32_1 = arith.constant 0 : i32
    return %c0_i32, %c0_i32_0 : i32, i32
  }
  func.func @transform_15(%arg0: i32) -> (i32, i32, i32) {
    %c0_i32 = arith.constant 0 : i32
    %c0_i32_0 = arith.constant 0 : i32
    %c0_i32_1 = arith.constant 0 : i32
    return %arg0, %c0_i32, %c0_i32_0 : i32, i32, i32
  }
}

</mosaic_0001>

<bundles_post_ra>
// kernel: tile.38
= control target key start
LH: loop header
LB: loop body
LE: loop exit
PB: predicated region body
PF: predicated region fallthrough
CT: control target
= control target key end

     0   :  { %s22_s0 = inlined_call_operand.vmem [shape: f32[16], index: 0, kind: input, shape index: {}]   ;;  %s23_s1 = inlined_call_operand.vmem [shape: f32[8,16], index: 1, kind: output, shape index: {}]  }
   0x1   :  { %v4_v0 = vld [vmem:[%s22_s0] ss:$0 sm:$0xff] }
   0x2   :  { %5 = vst [vmem:[%s23_s1] sm:$0xff] %v4_v0 }

// kernel: tile.39
= control target key start
LH: loop header
LB: loop body
LE: loop exit
PB: predicated region body
PF: predicated region fallthrough
CT: control target
= control target key end

     0   :  { %s67_s10 = smov 112   ;;  %s68_s11 = smov 80   ;;  %vm3_vm0 = vcmask 130048   ;;  %vm9_vm1 = vcmask 1048448   ;;  %vm15_vm2 = vcmask 917248   ;;  %vm21_vm3 = vcmask 786048   ;;  %s111_s0 = inlined_call_operand.vmem [shape: f32[8,16], index: 0, kind: input, shape index: {}]   ;;  %s112_s1 = inlined_call_operand.vmem [shape: f32[1,128], index: 1, kind: output, shape index: {}]  }
   0x1   :  { %v53_v0 = vld [vmem:[%s111_s0 + $0x7] sm:$0x1]   ;;  %v55_v1 = vld [vmem:[%s111_s0 + $0x5] sm:$0x1]   ;;  %v54_v2 = vld [vmem:[%s111_s0 + $0x6] sm:$0x1]  }
   0x2   :  { %7 = vrot.lane.b32.xlu0 %v53_v0, %s67_s10  ;;  %19 = vrot.lane.b32.xlu1 %v55_v1, %s68_s11  ;;  %v56_v3 = vld [vmem:[%s111_s0 + $0x4] sm:$0x1]   ;;  %v2_v4 = vld [vmem:[%s111_s0] sm:$0x1]   ;;  %s69_s18 = smov 96   ;;  %s70_s19 = smov 64  }
   0x3   :  { %4 = vst.msk [vmem:[#allocation0] sm:$0x1] %vm3_vm0, %v2_v4   ;;  %v57_v5 = vld [vmem:[%s111_s0 + $0x3] sm:$0x1]   ;;  %v58_v6 = vld [vmem:[%s111_s0 + $0x2] sm:$0x1]  }
   0x4   :  { %s71_s24 = smov 48   ;;  %s72_s25 = smov 32   ;;  %v59_v7 = vld [vmem:[%s111_s0 + $0x1] sm:$0x1]   ;;  %vm27_vm4 = vcmask 654848   ;;  %vm33_vm5 = vcmask 523648  }
   0x5   :  { %s73_s0 = smov 16   ;;  %vm39_vm6 = vcmask 392448   ;;  %vm45_vm7 = vcmask 261248  }
   0x6   :  { %13 = vrot.lane.b32.xlu0 %v54_v2, %s69_s18  ;;  %25 = vrot.lane.b32.xlu1 %v56_v3, %s70_s19 }
   0xa   :  { %31 = vrot.lane.b32.xlu0 %v57_v5, %s71_s24  ;;  %37 = vrot.lane.b32.xlu1 %v58_v6, %s72_s25 }
   0xe   :  { %43 = vrot.lane.b32.xlu0 %v59_v7, %s73_s0 }
  0x74   :  { %v8_v8 = vpop.permute.xlu0 %7   ;;  %v20_v9 = vpop.permute.xlu1 %19  }
  0x75   :  { %10 = vst.msk [vmem:[#allocation0] sm:$0x1] %vm9_vm1, %v8_v8  }
  0x78   :  { %v14_v10 = vpop.permute.xlu0 %13   ;;  %v26_v11 = vpop.permute.xlu1 %25  }
  0x79   :  { %16 = vst.msk [vmem:[#allocation0] sm:$0x1] %vm15_vm2, %v14_v10  }
  0x7a   :  { %22 = vst.msk [vmem:[#allocation0] sm:$0x1] %vm21_vm3, %v20_v9  }
  0x7b   :  { %28 = vst.msk [vmem:[#allocation0] sm:$0x1] %vm27_vm4, %v26_v11  }
  0x7c   :  { %v32_v12 = vpop.permute.xlu0 %31   ;;  %v38_v13 = vpop.permute.xlu1 %37  }
  0x7d   :  { %34 = vst.msk [vmem:[#allocation0] sm:$0x1] %vm33_vm5, %v32_v12  }
  0x7e   :  { %40 = vst.msk [vmem:[#allocation0] sm:$0x1] %vm39_vm6, %v38_v13  }
  0x80   :  { %v44_v14 = vpop.permute.xlu0 %43  }
  0x81   :  { %46 = vst.msk [vmem:[#allocation0] sm:$0x1] %vm45_vm7, %v44_v14  }
  0x88   :  { %v50_v15 = vld [vmem:[#allocation0] sm:$0x1] }
  0x89   :  { %52 = vst [vmem:[%s112_s1] sm:$0x1] %v50_v15 }

// kernel: tile.43
= control target key start
LH: loop header
LB: loop body
LE: loop exit
PB: predicated region body
PF: predicated region fallthrough
CT: control target
= control target key end

     0   :  { %s22_s0 = inlined_call_operand.vmem [shape: f32[32], index: 0, kind: input, shape index: {}]   ;;  %s23_s1 = inlined_call_operand.vmem [shape: f32[4,32], index: 1, kind: output, shape index: {}]  }
   0x1   :  { %v4_v0 = vld [vmem:[%s22_s0] ss:$0 sm:$0xff] }
   0x2   :  { %5 = vst [vmem:[%s23_s1] sm:$0xf] %v4_v0 }

// kernel: tile.44
= control target key start
LH: loop header
LB: loop body
LE: loop exit
PB: predicated region body
PF: predicated region fallthrough
CT: control target
= control target key end

     0   :  { %vm7_vm0 = vcmask 261120   ;;  %s37_s8 = smov 32   ;;  %s38_s9 = smov 64   ;;  %vm13_vm1 = vcmask 1048320   ;;  %vm19_vm2 = vcmask 785920   ;;  %vm25_vm3 = vcmask 523520   ;;  %s55_s0 = inlined_call_operand.vmem [shape: f32[4,32], index: 0, kind: input, shape index: {}]   ;;  %s56_s1 = inlined_call_operand.vmem [shape: f32[1,128], index: 1, kind: output, shape index: {}]  }
   0x1   :  { %v4_v0 = vld [vmem:[%s55_s0] sm:$0xf]  ;;  %s36_s0 = smov 96  }
   0x2   :  { %5 = vst [vmem:[#allocation1] sm:$0xf] %v4_v0 }
   0x9   :  { %v10_v1 = vld [vmem:[#allocation1 + $0x3] sm:$0x1]   ;;  %v22_v2 = vld [vmem:[#allocation1 + $0x1] sm:$0x1]   ;;  %v6_v3 = vld [vmem:[#allocation1] sm:$0x1]  }
   0xa   :  { %11 = vrot.lane.b32.xlu0 %v10_v1, %s36_s0  ;;  %23 = vrot.lane.b32.xlu1 %v22_v2, %s37_s8  ;;  %v16_v4 = vld [vmem:[#allocation1 + $0x2] sm:$0x1]   ;;  %8 = vst.msk [vmem:[#allocation0] sm:$0x1] %vm7_vm0, %v6_v3  }
   0xe   :  { %17 = vrot.lane.b32.xlu0 %v16_v4, %s38_s9 }
  0x7c   :  { %v12_v5 = vpop.permute.xlu0 %11   ;;  %v24_v6 = vpop.permute.xlu1 %23  }
  0x7d   :  { %14 = vst.msk [vmem:[#allocation0] sm:$0x1] %vm13_vm1, %v12_v5  }
  0x80   :  { %v18_v7 = vpop.permute.xlu0 %17  }
  0x81   :  { %20 = vst.msk [vmem:[#allocation0] sm:$0x1] %vm19_vm2, %v18_v7  }
  0x82   :  { %26 = vst.msk [vmem:[#allocation0] sm:$0x1] %vm25_vm3, %v24_v6  }
  0x89   :  { %v30_v8 = vld [vmem:[#allocation0] sm:$0x1] }
  0x8a   :  { %32 = vst [vmem:[%s56_s1] sm:$0x1] %v30_v8 }

// kernel: tile.53
= control target key start
LH: loop header
LB: loop body
LE: loop exit
PB: predicated region body
PF: predicated region fallthrough
CT: control target
= control target key end

     0   :  { %s22_s0 = inlined_call_operand.vmem [shape: f32[16], index: 0, kind: input, shape index: {}]   ;;  %s23_s1 = inlined_call_operand.vmem [shape: f32[4,16], index: 1, kind: output, shape index: {}]  }
   0x1   :  { %v4_v0 = vld [vmem:[%s22_s0] ss:$0 sm:$0xff] }
   0x2   :  { %5 = vst [vmem:[%s23_s1] sm:$0xf] %v4_v0 }

// kernel: tile.54
= control target key start
LH: loop header
LB: loop body
LE: loop exit
PB: predicated region body
PF: predicated region fallthrough
CT: control target
= control target key end

     0   :  { %vm7_vm0 = vcmask 130048   ;;  %s37_s8 = smov 16   ;;  %s38_s9 = smov 32   ;;  %vm13_vm1 = vcmask 523648   ;;  %vm19_vm2 = vcmask 392448   ;;  %vm25_vm3 = vcmask 261248   ;;  %s55_s0 = inlined_call_operand.vmem [shape: f32[4,16], index: 0, kind: input, shape index: {}]   ;;  %s56_s1 = inlined_call_operand.vmem [shape: f32[1,64], index: 1, kind: output, shape index: {}]  }
   0x1   :  { %v4_v0 = vld [vmem:[%s55_s0] sm:$0xf]  ;;  %s36_s0 = smov 48  }
   0x2   :  { %5 = vst [vmem:[#allocation1] sm:$0xf] %v4_v0 }
   0x9   :  { %v10_v1 = vld [vmem:[#allocation1 + $0x3] sm:$0x1]   ;;  %v22_v2 = vld [vmem:[#allocation1 + $0x1] sm:$0x1]   ;;  %v6_v3 = vld [vmem:[#allocation1] sm:$0x1]  }
   0xa   :  { %11 = vrot.lane.b32.xlu0 %v10_v1, %s36_s0  ;;  %23 = vrot.lane.b32.xlu1 %v22_v2, %s37_s8  ;;  %v16_v4 = vld [vmem:[#allocation1 + $0x2] sm:$0x1]   ;;  %8 = vst.msk [vmem:[#allocation0] sm:$0x1] %vm7_vm0, %v6_v3  }
   0xe   :  { %17 = vrot.lane.b32.xlu0 %v16_v4, %s38_s9 }
  0x7c   :  { %v12_v5 = vpop.permute.xlu0 %11   ;;  %v24_v6 = vpop.permute.xlu1 %23  }
  0x7d   :  { %14 = vst.msk [vmem:[#allocation0] sm:$0x1] %vm13_vm1, %v12_v5  }
  0x80   :  { %v18_v7 = vpop.permute.xlu0 %17  }
  0x81   :  { %20 = vst.msk [vmem:[#allocation0] sm:$0x1] %vm19_vm2, %v18_v7  }
  0x82   :  { %26 = vst.msk [vmem:[#allocation0] sm:$0x1] %vm25_vm3, %v24_v6  }
  0x89   :  { %v30_v8 = vld [vmem:[#allocation0] sm:$0x1] }
  0x8a   :  { %32 = vst [vmem:[%s56_s1] sm:$0x1] %v30_v8 }

// kernel: encoder_forward.1
= control target key start
LH: loop header
LB: loop body
LE: loop exit
PB: predicated region body
PF: predicated region fallthrough
CT: control target
= control target key end

     0   :  { %vm3362_vm0 = vmmov 0   ;;  %vm1410_vm1 = vcmask 523264   ;;  %s4614_s1 = inlined_call_operand.vmem [shape: f32[512,128], index: 1, kind: input, shape index: {}]   ;;  %s4615_s0 = inlined_call_operand.vmem [shape: f32[1,2,8,512], index: 0, kind: input, shape index: {}]   ;;  %s4616_s3 = inlined_call_operand.vmem [shape: f32[4,128,128], index: 3, kind: input, shape index: {}]   ;;  %s4617_s2 = inlined_call_operand.vmem [shape: f32[1,128], index: 2, kind: input, shape index: {}]   ;;  %s4618_s5 = inlined_call_operand.vmem [shape: f32[3,128,128], index: 5, kind: input, shape index: {}]   ;;  %s4619_s4 = inlined_call_operand.vmem [shape: f32[1,128], index: 4, kind: input, shape index: {}]   ;;  %s4620_s7 = inlined_call_operand.vmem [shape: f32[3,128,64], index: 7, kind: input, shape index: {}]   ;;  %s4621_s6 = inlined_call_operand.vmem [shape: f32[1,128], index: 6, kind: input, shape index: {}]   ;;  %s4622_s9 = inlined_call_operand.vmem [shape: f32[64,128], index: 9, kind: input, shape index: {}]   ;;  %s4623_s11 = inlined_call_operand.vmem [shape: f32[3,128,64], index: 11, kind: input, shape index: {}]   ;;  %s4624_s8 = inlined_call_operand.vmem [shape: f32[1,64], index: 8, kind: input, shape index: {}]   ;;  %s4625_s10 = inlined_call_operand.vmem [shape: f32[1,128], index: 10, kind: input, shape index: {}]   ;;  %s4626_s13 = inlined_call_operand.vmem [shape: f32[64,128], index: 13, kind: input, shape index: {}]   ;;  %s4627_s12 = inlined_call_operand.vmem [shape: f32[1,64], index: 12, kind: input, shape index: {}]   ;;  %s4628_s14 = inlined_call_operand.vmem [shape: f32[1,128], index: 14, kind: input, shape index: {}]   ;;  %s4629_s15 = inlined_call_operand.vmem [shape: f32[1,8,128], index: 15, kind: output, shape index: {}]  }
   0x1   :  { %v76_v0 = vld [vmem:[%s4614_s1 + $0x80] sm:$0xff]  ;;  %v77_v1 = vld [vmem:[%s4614_s1 + $0x88] sm:$0xff]  ;;  %v78_v11 = vld [vmem:[%s4614_s1 + $0x90] sm:$0xff] }
   0x2   :  { %v60_v2 = vld [vmem:[%s4614_s1] sm:$0xff]  ;;  %v3453_v3 = vpack.c.bf16 %v77_v1, %v76_v0  ;;  %v61_v4 = vld [vmem:[%s4614_s1 + $0x8] sm:$0xff]  ;;  %v79_v13 = vld [vmem:[%s4614_s1 + $0x98] sm:$0xff] }
   0x3   :  { %v108_v5 = vld [vmem:[%s4614_s1 + $0x180] sm:$0xff]  ;;  %v109_v6 = vld [vmem:[%s4614_s1 + $0x188] sm:$0xff]  ;;  %v3464_v7 = vpack.c.bf16 %v61_v4, %v60_v2  ;;  %v62_v14 = vld [vmem:[%s4614_s1 + $0x10] sm:$0xff]  ;;  %v3491_v16 = vpack.c.bf16 %v79_v13, %v78_v11 }
   0x4   :  { %v3466_v8 = vpack.c.bf16 %v109_v6, %v108_v5  ;;  %v92_v9 = vld [vmem:[%s4614_s1 + $0x100] sm:$0xff]  ;;  %v93_v10 = vld [vmem:[%s4614_s1 + $0x108] sm:$0xff]  ;;  %2895 = vmatprep.subr.bf16.mxu0 %v3453_v3  ;;  %v63_v15 = vld [vmem:[%s4614_s1 + $0x18] sm:$0xff] }
   0x5   :  { %v3478_v12 = vpack.c.bf16 %v93_v10, %v92_v9  ;;  %2897 = vmatpush3.bf16.msra.mxu0 %v3464_v7  ;;  %v3493_v17 = vpack.c.bf16 %v63_v15, %v62_v14  ;;  %v110_v18 = vld [vmem:[%s4614_s1 + $0x190] sm:$0xff]  ;;  %v111_v19 = vld [vmem:[%s4614_s1 + $0x198] sm:$0xff]  ;;  %v80_v23 = vld [vmem:[%s4614_s1 + $0xa0] sm:$0xff] }
   0x6   :  { %2927 = vmatprep.subr.bf16.mxu1 %v3466_v8  ;;  %v94_v20 = vld [vmem:[%s4614_s1 + $0x110] sm:$0xff]  ;;  %v3505_v21 = vpack.c.bf16 %v111_v19, %v110_v18  ;;  %v95_v22 = vld [vmem:[%s4614_s1 + $0x118] sm:$0xff]  ;;  %v81_v24 = vld [vmem:[%s4614_s1 + $0xa8] sm:$0xff]  ;;  %2899 = vmatprep.subr.bf16.mxu0 %v3491_v16 }
   0x7   :  { %2929 = vmatpush3.bf16.msra.mxu1 %v3478_v12  ;;  %v3517_v25 = vpack.c.bf16 %v95_v22, %v94_v20  ;;  %v3519_v26 = vpack.c.bf16 %v81_v24, %v80_v23  ;;  %v64_v27 = vld [vmem:[%s4614_s1 + $0x20] sm:$0xff]  ;;  %v65_v28 = vld [vmem:[%s4614_s1 + $0x28] sm:$0xff]  ;;  %v82_v35 = vld [vmem:[%s4614_s1 + $0xb0] sm:$0xff] }
   0x8   :  { %v112_v29 = vld [vmem:[%s4614_s1 + $0x1a0] sm:$0xff]  ;;  %2931 = vmatprep.subr.bf16.mxu1 %v3505_v21  ;;  %v113_v30 = vld [vmem:[%s4614_s1 + $0x1a8] sm:$0xff]  ;;  %v3541_v33 = vpack.c.bf16 %v65_v28, %v64_v27  ;;  %v83_v36 = vld [vmem:[%s4614_s1 + $0xb8] sm:$0xff] }
   0x9   :  { %v96_v31 = vld [vmem:[%s4614_s1 + $0x120] sm:$0xff]  ;;  %v97_v32 = vld [vmem:[%s4614_s1 + $0x128] sm:$0xff]  ;;  %2901 = vmatpush3.bf16.msra.mxu0 %v3493_v17  ;;  %v3543_v34 = vpack.c.bf16 %v113_v30, %v112_v29  ;;  %v66_v37 = vld [vmem:[%s4614_s1 + $0x30] sm:$0xff]  ;;  %v3558_v39 = vpack.c.bf16 %v83_v36, %v82_v35 }
   0xa   :  { %2903 = vmatprep.subr.bf16.mxu0 %v3519_v26  ;;  %v3556_v38 = vpack.c.bf16 %v97_v32, %v96_v31  ;;  %v67_v40 = vld [vmem:[%s4614_s1 + $0x38] sm:$0xff]  ;;  %v114_v41 = vld [vmem:[%s4614_s1 + $0x1b0] sm:$0xff]  ;;  %v84_v46 = vld [vmem:[%s4614_s1 + $0xc0] sm:$0xff] }
   0xb   :  { %2933 = vmatpush3.bf16.msra.mxu1 %v3517_v25  ;;  %v115_v42 = vld [vmem:[%s4614_s1 + $0x1b8] sm:$0xff]  ;;  %v98_v44 = vld [vmem:[%s4614_s1 + $0x130] sm:$0xff]  ;;  %v85_v47 = vld [vmem:[%s4614_s1 + $0xc8] sm:$0xff]  ;;  %v3585_v48 = vpack.c.bf16 %v67_v40, %v66_v37 }
   0xc   :  { %2935 = vmatprep.subr.bf16.mxu1 %v3543_v34  ;;  %v3570_v43 = vpack.c.bf16 %v115_v42, %v114_v41  ;;  %v99_v45 = vld [vmem:[%s4614_s1 + $0x138] sm:$0xff]  ;;  %v116_v49 = vld [vmem:[%s4614_s1 + $0x1c0] sm:$0xff]  ;;  %v117_v50 = vld [vmem:[%s4614_s1 + $0x1c8] sm:$0xff]  ;;  %v3597_v52 = vpack.c.bf16 %v85_v47, %v84_v46 }
   0xd   :  { %2905 = vmatpush3.bf16.msra.mxu0 %v3541_v33  ;;  %v3595_v51 = vpack.c.bf16 %v99_v45, %v98_v44  ;;  %v68_v53 = vld [vmem:[%s4614_s1 + $0x40] sm:$0xff]  ;;  %v69_v54 = vld [vmem:[%s4614_s1 + $0x48] sm:$0xff]  ;;  %v3609_v56 = vpack.c.bf16 %v117_v50, %v116_v49  ;;  %v86_v58 = vld [vmem:[%s4614_s1 + $0xd0] sm:$0xff] }
   0xe   :  { %2907 = vmatprep.subr.bf16.mxu0 %v3558_v39  ;;  %v100_v55 = vld [vmem:[%s4614_s1 + $0x140] sm:$0xff]  ;;  %v101_v57 = vld [vmem:[%s4614_s1 + $0x148] sm:$0xff]  ;;  %v87_v59 = vld [vmem:[%s4614_s1 + $0xd8] sm:$0xff]  ;;  %v3627_v62 = vpack.c.bf16 %v69_v54, %v68_v53 }
   0xf   :  { %2937 = vmatpush3.bf16.msra.mxu1 %v3556_v38  ;;  %v118_v60 = vld [vmem:[%s4614_s1 + $0x1d0] sm:$0xff]  ;;  %v119_v61 = vld [vmem:[%s4614_s1 + $0x1d8] sm:$0xff]  ;;  %v3631_v63 = vpack.c.bf16 %v101_v57, %v100_v55  ;;  %v3633_v0 = vpack.c.bf16 %v87_v59, %v86_v58  ;;  %v88_v9 = vld [vmem:[%s4614_s1 + $0xe0] sm:$0xff] }
  0x10   :  { %2939 = vmatprep.subr.bf16.mxu1 %v3570_v43  ;;  %v70_v1 = vld [vmem:[%s4614_s1 + $0x50] sm:$0xff]  ;;  %v71_v2 = vld [vmem:[%s4614_s1 + $0x58] sm:$0xff]  ;;  %v3645_v5 = vpack.c.bf16 %v119_v61, %v118_v60  ;;  %v89_v10 = vld [vmem:[%s4614_s1 + $0xe8] sm:$0xff] }
  0x11   :  { %2909 = vmatpush3.bf16.msra.mxu0 %v3585_v48  ;;  %v102_v4 = vld [vmem:[%s4614_s1 + $0x150] sm:$0xff]  ;;  %v103_v6 = vld [vmem:[%s4614_s1 + $0x158] sm:$0xff]  ;;  %v120_v11 = vld [vmem:[%s4614_s1 + $0x1e0] sm:$0xff]  ;;  %v3663_v14 = vpack.c.bf16 %v71_v2, %v70_v1  ;;  %v3675_v20 = vpack.c.bf16 %v89_v10, %v88_v9  ;;  %v3363_v1 = vmov 0.0  }
  0x12   :  { %2911 = vmatprep.subr.bf16.mxu0 %v3597_v52  ;;  %v121_v13 = vld [vmem:[%s4614_s1 + $0x1e8] sm:$0xff]  ;;  %v72_v15 = vld [vmem:[%s4614_s1 + $0x60] sm:$0xff]  ;;  %v3673_v19 = vpack.c.bf16 %v103_v6, %v102_v4  ;;  %v90_v28 = vld [vmem:[%s4614_s1 + $0xf0] sm:$0xff]  ;;  %51 = vst [vmem:[#allocation2 + $0x10] sm:$0x3] %v3363_v1 }
  0x13   :  { %2941 = vmatpush3.bf16.msra.mxu1 %v3595_v51  ;;  %v73_v18 = vld [vmem:[%s4614_s1 + $0x68] sm:$0xff]  ;;  %v104_v22 = vld [vmem:[%s4614_s1 + $0x160] sm:$0xff]  ;;  %v2950_v27 = vpack.c.bf16 %v121_v13, %v120_v11  ;;  %v91_v29 = vld [vmem:[%s4614_s1 + $0xf8] sm:$0xff]  ;;  %52 = vst [vmem:[#allocation2 + $0xa] sm:$0x3] %v3363_v1 }
  0x14   :  { %2943 = vmatprep.subr.bf16.mxu1 %v3609_v56  ;;  %v105_v23 = vld [vmem:[%s4614_s1 + $0x168] sm:$0xff]  ;;  %v59_v30 = vld [vmem:[%s4615_s0 + $0x18] sm:$0xff]  ;;  %v122_v31 = vld [vmem:[%s4614_s1 + $0x1f0] sm:$0xff]  ;;  %v2920_v35 = vpack.c.bf16 %v73_v18, %v72_v15  ;;  %v2922_v37 = vpack.c.bf16 %v91_v29, %v90_v28  ;;  %54 = vst [vmem:[#allocation3] sm:$0x3] %v3363_v1 }
  0x15   :  { %2913 = vmatpush3.bf16.msra.mxu0 %v3627_v62  ;;  %v57_v24 = vld [vmem:[%s4615_s0 + $0x8] sm:$0xff]  ;;  %v123_v32 = vld [vmem:[%s4614_s1 + $0x1f8] sm:$0xff]  ;;  %265 = vmatprep.mubr.f32.mxu1 %v59_v30  ;;  %v2952_v36 = vpack.c.bf16 %v105_v23, %v104_v22  ;;  %v74_v40 = vld [vmem:[%s4614_s1 + $0x70] sm:$0xff]  ;;  %55 = vst [vmem:[#allocation3 + $0xa] sm:$0x3] %v3363_v1 }
  0x16   :  { %2915 = vmatprep.subr.bf16.mxu0 %v3633_v0  ;;  %195 = vmatprep.mubr.f32.mxu0 %v57_v24  ;;  %v75_v41 = vld [vmem:[%s4614_s1 + $0x78] sm:$0xff]  ;;  %v2954_v42 = vpack.c.bf16 %v123_v32, %v122_v31  ;;  %v106_v44 = vld [vmem:[%s4614_s1 + $0x170] sm:$0xff]  ;;  %v56_v49 = vld [vmem:[%s4615_s0] sm:$0xff] }
  0x17   :  { %2945 = vmatpush3.bf16.msra.mxu1 %v3631_v63  ;;  %v107_v45 = vld [vmem:[%s4614_s1 + $0x178] sm:$0xff]  ;;  %v2924_v46 = vpack.c.bf16 %v75_v41, %v74_v40  ;;  %v58_v50 = vld [vmem:[%s4615_s0 + $0x10] sm:$0xff]  ;;  %v1866_v53 = vld [vmem:[%s4615_s0 + $0x28] sm:$0xff] }
  0x18   :  { %2947 = vmatprep.subr.bf16.mxu1 %v3645_v5  ;;  %v2956_v47 = vpack.c.bf16 %v107_v45, %v106_v44  ;;  %v1868_v54 = vld [vmem:[%s4615_s0 + $0x38] sm:$0xff]  ;;  %v1882_v59 = vld [vmem:[%s4616_s3 + $0xe0] sm:$0xff]  ;;  %v1883_v60 = vld [vmem:[%s4616_s3 + $0xe8] sm:$0xff] }
  0x19   :  { %2917 = vmatpush3.bf16.msra.mxu0 %v3663_v14  ;;  %v1881_v57 = vld [vmem:[%s4616_s3 + $0xd8] sm:$0xff]  ;;  %v3041_v61 = vpack.c.bf16 %v1883_v60, %v1882_v59  ;;  %v493_v2 = vld [vmem:[%s4616_s3] sm:$0xff]  ;;  %v494_v4 = vld [vmem:[%s4616_s3 + $0x8] sm:$0xff] }
  0x1a   :  { %2919 = vmatprep.subr.bf16.mxu0 %v3675_v20  ;;  %v495_v6 = vld [vmem:[%s4616_s3 + $0x10] sm:$0xff]  ;;  %v496_v9 = vld [vmem:[%s4616_s3 + $0x18] sm:$0xff]  ;;  %v497_v11 = vld [vmem:[%s4616_s3 + $0x20] sm:$0xff] }
  0x1b   :  { %2949 = vmatpush3.bf16.msra.mxu1 %v3673_v19  ;;  %v3050_v10 = vpack.c.bf16 %v496_v9, %v495_v6  ;;  %v498_v13 = vld [vmem:[%s4616_s3 + $0x28] sm:$0xff]  ;;  %v499_v15 = vld [vmem:[%s4616_s3 + $0x30] sm:$0xff]  ;;  %v500_v18 = vld [vmem:[%s4616_s3 + $0x38] sm:$0xff] }
  0x1c   :  { %2951 = vmatprep.subr.bf16.mxu1 %v2950_v27  ;;  %v502_v22 = vld [vmem:[%s4616_s3 + $0x48] sm:$0xff]  ;;  %v503_v24 = vld [vmem:[%s4616_s3 + $0x50] sm:$0xff]  ;;  %v505_v29 = vld [vmem:[%s4616_s3 + $0x60] sm:$0xff] }
  0x1d   :  { %2921 = vmatpush3.bf16.msra.mxu0 %v2920_v35  ;;  %v506_v30 = vld [vmem:[%s4616_s3 + $0x68] sm:$0xff]  ;;  %v507_v32 = vld [vmem:[%s4616_s3 + $0x70] sm:$0xff]  ;;  %v1864_v40 = vld [vmem:[%s4617_s2] ss:$0 sm:$0xff] }
  0x1e   :  { %2923 = vmatprep.subr.bf16.mxu0 %v2922_v37  ;;  %v3065_v31 = vpack.c.bf16 %v506_v30, %v505_v29  ;;  %v1900_v59 = vld [vmem:[%s4616_s3 + $0x170] sm:$0xff]  ;;  %v1901_v60 = vld [vmem:[%s4616_s3 + $0x178] sm:$0xff]  ;;  %v1910_v29 = vld [vmem:[%s4616_s3 + $0x1c0] sm:$0xff] }
  0x1f   :  { %2953 = vmatpush3.bf16.msra.mxu1 %v2952_v36  ;;  %v1911_v30 = vld [vmem:[%s4616_s3 + $0x1c8] sm:$0xff] }
  0x20   :  { %2955 = vmatprep.subr.bf16.mxu1 %v2954_v42 }
  0x21   :  { %2925 = vmatpush3.bf16.msra.mxu0 %v2924_v46 }
  0x22   :  { %2959 = vmatprep.subr.bf16.mxu0 %v3453_v3  ;;  %v1870_v3 = vld [vmem:[%s4616_s3 + $0x80] sm:$0xff] }
  0x23   :  { %2957 = vmatpush3.bf16.msra.mxu1 %v2956_v47 }
  0x24   :  { %2991 = vmatprep.subr.bf16.mxu1 %v3466_v8  ;;  %196 = vmatmul.mubr.f32.vlgmr.msra.gmra.mrb[0].mxu0 %v56_v49  ;;  %v1865_v8 = vld [vmem:[%s4615_s0 + $0x20] sm:$0xff] }
  0x25   :  { %2961 = vmatpush3.bf16.msra.mxu0 %v3464_v7  ;;  %413 = vmatprep.mubr.f32.mxu0 %v1866_v53  ;;  %v1871_v7 = vld [vmem:[%s4616_s3 + $0x88] sm:$0xff]  ;;  %v1886_v49 = vld [vmem:[%s4616_s3 + $0x100] sm:$0xff] }
  0x26   :  { %266 = vmatmul.mubr.f32.vlgmr.msra.gmra.mrb[0].mxu1 %v58_v50  ;;  %2963 = vmatprep.subr.bf16.mxu0 %v3491_v16  ;;  %v1867_v16 = vld [vmem:[%s4615_s0 + $0x30] sm:$0xff]  ;;  %v1887_v50 = vld [vmem:[%s4616_s3 + $0x108] sm:$0xff] }
  0x27   :  { %2993 = vmatpush3.bf16.msra.mxu1 %v3478_v12  ;;  %483 = vmatprep.mubr.f32.mxu1 %v1868_v54  ;;  %v3023_v12 = vpack.c.bf16 %v1871_v7, %v1870_v3  ;;  %v3071_v54 = vpack.c.bf16 %v1887_v50, %v1886_v49  ;;  %v1888_v7 = vld [vmem:[%s4616_s3 + $0x110] sm:$0xff]  ;;  %v1920_v49 = vld [vmem:[%s4618_s5 + $0x88] sm:$0xff]  ;;  %v857_v50 = vld [vmem:[%s4618_s5] sm:$0xff] }
  0x28   :  { %2995 = vmatprep.subr.bf16.mxu1 %v3505_v21  ;;  %v1872_v21 = vld [vmem:[%s4616_s3 + $0x90] sm:$0xff] }
  0x29   :  { %2965 = vmatpush3.bf16.msra.mxu0 %v3493_v17  ;;  %v3361_v17 = vmov 0.0|0.0  }
  0x2a   :  { %2967 = vmatprep.subr.bf16.mxu0 %v3519_v26 }
  0x2b   :  { %2997 = vmatpush3.bf16.msra.mxu1 %v3517_v25  ;;  %v1873_v25 = vld [vmem:[%s4616_s3 + $0x98] sm:$0xff] }
  0x2c   :  { %2999 = vmatprep.subr.bf16.mxu1 %v3543_v34  ;;  %v3026_v26 = vpack.c.bf16 %v1873_v25, %v1872_v21  ;;  %v1875_v34 = vld [vmem:[%s4616_s3 + $0xa8] sm:$0xff] }
  0x2d   :  { %2969 = vmatpush3.bf16.msra.mxu0 %v3541_v33  ;;  %v1874_v33 = vld [vmem:[%s4616_s3 + $0xa0] sm:$0xff]  ;;  %v1891_v21 = vld [vmem:[%s4616_s3 + $0x128] sm:$0xff] }
  0x2e   :  { %2971 = vmatprep.subr.bf16.mxu0 %v3558_v39  ;;  %v1876_v39 = vld [vmem:[%s4616_s3 + $0xb0] sm:$0xff] }
  0x2f   :  { %3001 = vmatpush3.bf16.msra.mxu1 %v3556_v38  ;;  %v3029_v38 = vpack.c.bf16 %v1875_v34, %v1874_v33  ;;  %v1893_v33 = vld [vmem:[%s4616_s3 + $0x138] sm:$0xff] }
  0x30   :  { %3003 = vmatprep.subr.bf16.mxu1 %v3570_v43  ;;  %v1877_v43 = vld [vmem:[%s4616_s3 + $0xb8] sm:$0xff] }
  0x31   :  { %2973 = vmatpush3.bf16.msra.mxu0 %v3585_v48  ;;  %v3032_v48 = vpack.c.bf16 %v1877_v43, %v1876_v39  ;;  %v1895_v39 = vld [vmem:[%s4616_s3 + $0x148] sm:$0xff] }
  0x32   :  { %2975 = vmatprep.subr.bf16.mxu0 %v3597_v52  ;;  %v1879_v52 = vld [vmem:[%s4616_s3 + $0xc8] sm:$0xff] }
  0x33   :  { %3005 = vmatpush3.bf16.msra.mxu1 %v3595_v51  ;;  %v1878_v51 = vld [vmem:[%s4616_s3 + $0xc0] sm:$0xff] }
  0x34   :  { %3007 = vmatprep.subr.bf16.mxu1 %v3609_v56  ;;  %v3035_v55 = vpack.c.bf16 %v1879_v52, %v1878_v51  ;;  %v1880_v56 = vld [vmem:[%s4616_s3 + $0xd0] sm:$0xff]  ;;  %v1897_v51 = vld [vmem:[%s4616_s3 + $0x158] sm:$0xff] }
  0x35   :  { %2977 = vmatpush3.bf16.msra.mxu0 %v3627_v62  ;;  %v3038_v58 = vpack.c.bf16 %v1881_v57, %v1880_v56  ;;  %v1884_v62 = vld [vmem:[%s4616_s3 + $0xf0] sm:$0xff]  ;;  %v1899_v56 = vld [vmem:[%s4616_s3 + $0x168] sm:$0xff] }
  0x36   :  { %2979 = vmatprep.subr.bf16.mxu0 %v3633_v0 }
  0x37   :  { %3009 = vmatpush3.bf16.msra.mxu1 %v3631_v63  ;;  %v1885_v63 = vld [vmem:[%s4616_s3 + $0xf8] sm:$0xff] }
  0x38   :  { %3011 = vmatprep.subr.bf16.mxu1 %v3645_v5  ;;  %v3044_v0 = vpack.c.bf16 %v1885_v63, %v1884_v62  ;;  %v3047_v5 = vpack.c.bf16 %v494_v4, %v493_v2  ;;  %v3092_v4 = vpack.c.bf16 %v1901_v60, %v1900_v59  ;;  %v1928_v59 = vld [vmem:[%s4618_s5 + $0xc8] sm:$0xff] }
  0x39   :  { %2981 = vmatpush3.bf16.msra.mxu0 %v3663_v14  ;;  %v3053_v14 = vpack.c.bf16 %v498_v13, %v497_v11  ;;  %v1903_v11 = vld [vmem:[%s4616_s3 + $0x188] sm:$0xff] }
  0x3a   :  { %2983 = vmatprep.subr.bf16.mxu0 %v3675_v20  ;;  %v501_v20 = vld [vmem:[%s4616_s3 + $0x40] sm:$0xff] }
  0x3b   :  { %3013 = vmatpush3.bf16.msra.mxu1 %v3673_v19  ;;  %v3056_v19 = vpack.c.bf16 %v500_v18, %v499_v15  ;;  %v3059_v23 = vpack.c.bf16 %v502_v22, %v501_v20  ;;  %v1905_v15 = vld [vmem:[%s4616_s3 + $0x198] sm:$0xff]  ;;  %v1906_v20 = vld [vmem:[%s4616_s3 + $0x1a0] sm:$0xff]  ;;  %v1907_v22 = vld [vmem:[%s4616_s3 + $0x1a8] sm:$0xff] }
  0x3c   :  { %3015 = vmatprep.subr.bf16.mxu1 %v2950_v27  ;;  %v504_v27 = vld [vmem:[%s4616_s3 + $0x58] sm:$0xff] }
  0x3d   :  { %2985 = vmatpush3.bf16.msra.mxu0 %v2920_v35  ;;  %v3062_v28 = vpack.c.bf16 %v504_v27, %v503_v24  ;;  %v508_v35 = vld [vmem:[%s4616_s3 + $0x78] sm:$0xff]  ;;  %v1908_v24 = vld [vmem:[%s4616_s3 + $0x1b0] sm:$0xff] }
  0x3e   :  { %2987 = vmatprep.subr.bf16.mxu0 %v2922_v37  ;;  %v1909_v27 = vld [vmem:[%s4616_s3 + $0x1b8] sm:$0xff] }
  0x3f   :  { %3017 = vmatpush3.bf16.msra.mxu1 %v2952_v36  ;;  %v3068_v36 = vpack.c.bf16 %v508_v35, %v507_v32  ;;  %v1912_v32 = vld [vmem:[%s4616_s3 + $0x1d0] sm:$0xff]  ;;  %v1913_v35 = vld [vmem:[%s4616_s3 + $0x1d8] sm:$0xff] }
  0x40   :  { %3019 = vmatprep.subr.bf16.mxu1 %v2954_v42 }
  0x41   :  { %2989 = vmatpush3.bf16.msra.mxu0 %v2924_v46 }
  0x42   :  { %3022 = vmatprep.subr.bf16.mxu0 %v3361_v17 }
  0x43   :  { %3021 = vmatpush3.bf16.msra.mxu1 %v2956_v47 }
  0x44   :  { %3046 = vmatprep.subr.bf16.mxu1 %v3361_v17  ;;  %414 = vmatmul.mubr.f32.vlgmr.msra.gmra.mrb[2].mxu0 %v1865_v8  ;;  %v1889_v8 = vld [vmem:[%s4616_s3 + $0x118] sm:$0xff] }
  0x45   :  { %3024 = vmatpush3.bf16.msra.mxu0 %v3023_v12  ;;  %2433 = vmatprep.mubr.msk.f32.mxu0 %vm3362_vm0, %v3363_v1  ;;  %v3074_v12 = vpack.c.bf16 %v1889_v8, %v1888_v7  ;;  %v1922_v7 = vld [vmem:[%s4618_s5 + $0x98] sm:$0xff] }
  0x46   :  { %484 = vmatmul.mubr.f32.vlgmr.msra.gmra.mrb[2].mxu1 %v1867_v16  ;;  %3025 = vmatprep.subr.bf16.mxu0 %v3361_v17  ;;  %v1890_v16 = vld [vmem:[%s4616_s3 + $0x120] sm:$0xff] }
  0x47   :  { %2468 = vmatprep.mubr.msk.f32.mxu1 %vm3362_vm0, %v3363_v1  ;;  %3048 = vmatpush3.bf16.msra.mxu1 %v3047_v5  ;;  %v3077_v25 = vpack.c.bf16 %v1891_v21, %v1890_v16  ;;  %v860_v16 = vld [vmem:[%s4618_s5 + $0x18] sm:$0xff] }
  0x48   :  { %3049 = vmatprep.subr.bf16.mxu1 %v3361_v17 }
  0x49   :  { %3027 = vmatpush3.bf16.msra.mxu0 %v3026_v26  ;;  %v1892_v26 = vld [vmem:[%s4616_s3 + $0x130] sm:$0xff] }
  0x4a   :  { %3028 = vmatprep.subr.bf16.mxu0 %v3361_v17  ;;  %v3080_v34 = vpack.c.bf16 %v1893_v33, %v1892_v26  ;;  %v1923_v26 = vld [vmem:[%s4618_s5 + $0xa0] sm:$0xff]  ;;  %v1924_v33 = vld [vmem:[%s4618_s5 + $0xa8] sm:$0xff] }
  0x4b   :  { %3051 = vmatpush3.bf16.msra.mxu1 %v3050_v10  ;;  %v1902_v10 = vld [vmem:[%s4616_s3 + $0x180] sm:$0xff] }
  0x4c   :  { %3052 = vmatprep.subr.bf16.mxu1 %v3361_v17  ;;  %v3095_v13 = vpack.c.bf16 %v1903_v11, %v1902_v10  ;;  %v1933_v10 = vld [vmem:[%s4618_s5 + $0xf0] sm:$0xff]  ;;  %v1934_v11 = vld [vmem:[%s4618_s5 + $0xf8] sm:$0xff] }
  0x4d   :  { %3030 = vmatpush3.bf16.msra.mxu0 %v3029_v38  ;;  %v1894_v38 = vld [vmem:[%s4616_s3 + $0x140] sm:$0xff] }
  0x4e   :  { %3031 = vmatprep.subr.bf16.mxu0 %v3361_v17  ;;  %v3083_v43 = vpack.c.bf16 %v1895_v39, %v1894_v38  ;;  %v862_v38 = vld [vmem:[%s4618_s5 + $0x28] sm:$0xff]  ;;  %v3125_v39 = vpack.c.bf16 %v1924_v33, %v1923_v26  ;;  %v1943_v33 = vld [vmem:[%s4618_s5 + $0x140] sm:$0xff] }
  0x4f   :  { %3054 = vmatpush3.bf16.msra.mxu1 %v3053_v14  ;;  %v1904_v14 = vld [vmem:[%s4616_s3 + $0x190] sm:$0xff] }
  0x50   :  { %3055 = vmatprep.subr.bf16.mxu1 %v3361_v17 }
  0x51   :  { %3033 = vmatpush3.bf16.msra.mxu0 %v3032_v48  ;;  %v1896_v48 = vld [vmem:[%s4616_s3 + $0x150] sm:$0xff] }
  0x52   :  { %3034 = vmatprep.subr.bf16.mxu0 %v3361_v17  ;;  %v3086_v52 = vpack.c.bf16 %v1897_v51, %v1896_v48  ;;  %v1925_v48 = vld [vmem:[%s4618_s5 + $0xb0] sm:$0xff]  ;;  %v1926_v51 = vld [vmem:[%s4618_s5 + $0xb8] sm:$0xff] }
  0x53   :  { %3057 = vmatpush3.bf16.msra.mxu1 %v3056_v19  ;;  %v3098_v19 = vpack.c.bf16 %v1905_v15, %v1904_v14  ;;  %v868_v14 = vld [vmem:[%s4618_s5 + $0x58] sm:$0xff]  ;;  %v3140_v15 = vpack.c.bf16 %v1934_v11, %v1933_v10  ;;  %v1956_v11 = vld [vmem:[%s4620_s7 + $0xa0] sm:$0xff] }
  0x54   :  { %3058 = vmatprep.subr.bf16.mxu1 %v3361_v17  ;;  %v1134_v10 = vld [vmem:[%s4620_s7 + $0x18] sm:$0xff] }
  0x55   :  { %3036 = vmatpush3.bf16.msra.mxu0 %v3035_v55  ;;  %v1898_v55 = vld [vmem:[%s4616_s3 + $0x160] sm:$0xff] }
  0x56   :  { %3037 = vmatprep.subr.bf16.mxu0 %v3361_v17  ;;  %v3089_v57 = vpack.c.bf16 %v1899_v56, %v1898_v55  ;;  %v864_v55 = vld [vmem:[%s4618_s5 + $0x38] sm:$0xff]  ;;  %v3128_v56 = vpack.c.bf16 %v1926_v51, %v1925_v48  ;;  %v1947_v51 = vld [vmem:[%s4618_s5 + $0x160] sm:$0xff] }
  0x57   :  { %3060 = vmatpush3.bf16.msra.mxu1 %v3059_v23  ;;  %v3101_v23 = vpack.c.bf16 %v1907_v22, %v1906_v20  ;;  %v870_v20 = vld [vmem:[%s4618_s5 + $0x68] sm:$0xff] }
  0x58   :  { %3061 = vmatprep.subr.bf16.mxu1 %v3361_v17 }
  0x59   :  { %3039 = vmatpush3.bf16.msra.mxu0 %v3038_v58 }
  0x5a   :  { %3040 = vmatprep.subr.bf16.mxu0 %v3361_v17 }
  0x5b   :  { %3063 = vmatpush3.bf16.msra.mxu1 %v3062_v28  ;;  %v3104_v28 = vpack.c.bf16 %v1909_v27, %v1908_v24  ;;  %v872_v24 = vld [vmem:[%s4618_s5 + $0x78] sm:$0xff] }
  0x5c   :  { %3064 = vmatprep.subr.bf16.mxu1 %v3361_v17 }
  0x5d   :  { %3042 = vmatpush3.bf16.msra.mxu0 %v3041_v61 }
  0x5e   :  { %3043 = vmatprep.subr.bf16.mxu0 %v3361_v17 }
  0x5f   :  { %3066 = vmatpush3.bf16.msra.mxu1 %v3065_v31  ;;  %v3107_v31 = vpack.c.bf16 %v1911_v30, %v1910_v29 }
  0x60   :  { %3067 = vmatprep.subr.bf16.mxu1 %v3361_v17 }
  0x61   :  { %3045 = vmatpush3.bf16.msra.mxu0 %v3044_v0 }
  0x62   :  { %3070 = vmatprep.subr.bf16.mxu0 %v3361_v17 }
  0x63   :  { %3069 = vmatpush3.bf16.msra.mxu1 %v3068_v36  ;;  %v3110_v36 = vpack.c.bf16 %v1913_v35, %v1912_v32 }
  0x64   :  { %3094 = vmatprep.subr.bf16.mxu1 %v3361_v17 }
  0xf7   :  { %v2054_v37 = vpop.f32.mrb[0].mxu0 }
  0xf8   :  { %v2055_v41 = vpop.f32.mrb[1].mxu0 }
  0xf9   :  { %v2089_v42 = vpop.f32.mrb[0].mxu1  ;;  %v2056_v44 = vadd.f32 %v2055_v41, %v2054_v37  ;;  %v1914_v37 = vld [vmem:[%s4616_s3 + $0x1e0] sm:$0xff] }
  0xfa   :  { %v2090_v45 = vpop.f32.mrb[1].mxu1 }
  0xfb   :  { %v2091_v46 = vadd.f32 %v2090_v45, %v2089_v42  ;;  %v198_v47 = vadd.f32 %v2056_v44, %v1864_v40  ;;  %v1916_v42 = vld [vmem:[%s4616_s3 + $0x1f0] sm:$0xff]  ;;  %v1917_v44 = vld [vmem:[%s4616_s3 + $0x1f8] sm:$0xff] }
  0xfc   :  { %v3116_v45 = vpack.c.bf16 %v1917_v44, %v1916_v42 }
  0xfd   :  { %v268_v53 = vadd.f32 %v2091_v46, %v198_v47  ;;  %v1919_v47 = vld [vmem:[%s4618_s5 + $0x80] sm:$0xff] }
  0xff   :  { %v271_v3 = vmax.f32 %v268_v53, 0.0  ;;  %v3119_v53 = vpack.c.bf16 %v1920_v49, %v1919_v47 }
 0x101   :  { %272 = vst [vmem:[#allocation2 + $0x2] sm:$0xff] %v271_v3  ;;  %2434 = vmatmul.mubr.f32.vlgmr.msra.gmra.mrb[4].mxu0 %v271_v3  ;;  %v1921_v3 = vld [vmem:[%s4618_s5 + $0x90] sm:$0xff] }
 0x102   :  { %3072 = vmatpush3.bf16.msra.mxu0 %v3071_v54  ;;  %2503 = vmatprep.mubr.msk.f32.mxu0 %vm3362_vm0, %v3363_v1  ;;  %v858_v54 = vld [vmem:[%s4618_s5 + $0x8] sm:$0xff]  ;;  %v3122_v21 = vpack.c.bf16 %v1922_v7, %v1921_v3  ;;  %v1939_v7 = vld [vmem:[%s4618_s5 + $0x120] sm:$0xff] }
 0x103   :  { %3073 = vmatprep.subr.bf16.mxu0 %v3361_v17  ;;  %v3143_v8 = vpack.c.bf16 %v858_v54, %v857_v50  ;;  %v1938_v54 = vld [vmem:[%s4618_s5 + $0x118] sm:$0xff] }
 0x106   :  { %3075 = vmatpush3.bf16.msra.mxu0 %v3074_v12  ;;  %v859_v12 = vld [vmem:[%s4618_s5 + $0x10] sm:$0xff] }
 0x107   :  { %3076 = vmatprep.subr.bf16.mxu0 %v3361_v17 }
 0x108   :  { %v756_v46 = vld [vmem:[#allocation2 + $0x4] sm:$0xff] }
 0x10a   :  { %3078 = vmatpush3.bf16.msra.mxu0 %v3077_v25  ;;  %v3146_v25 = vpack.c.bf16 %v860_v16, %v859_v12  ;;  %v1941_v16 = vld [vmem:[%s4618_s5 + $0x130] sm:$0xff] }
 0x10b   :  { %3079 = vmatprep.subr.bf16.mxu0 %v3361_v17 }
 0x10e   :  { %3081 = vmatpush3.bf16.msra.mxu0 %v3080_v34  ;;  %v861_v34 = vld [vmem:[%s4618_s5 + $0x20] sm:$0xff] }
 0x10f   :  { %3082 = vmatprep.subr.bf16.mxu0 %v3361_v17 }
 0x112   :  { %3084 = vmatpush3.bf16.msra.mxu0 %v3083_v43  ;;  %v3149_v43 = vpack.c.bf16 %v862_v38, %v861_v34  ;;  %v1944_v34 = vld [vmem:[%s4618_s5 + $0x148] sm:$0xff] }
 0x113   :  { %3085 = vmatprep.subr.bf16.mxu0 %v3361_v17  ;;  %v3179_v38 = vpack.c.bf16 %v1944_v34, %v1943_v33 }
 0x116   :  { %3087 = vmatpush3.bf16.msra.mxu0 %v3086_v52  ;;  %v863_v52 = vld [vmem:[%s4618_s5 + $0x30] sm:$0xff] }
 0x117   :  { %v2124_v58 = vpop.f32.mrb[2].mxu0  ;;  %3088 = vmatprep.subr.bf16.mxu0 %v3361_v17 }
 0x118   :  { %v2125_v61 = vpop.f32.mrb[3].mxu0 }
 0x119   :  { %v2159_v62 = vpop.f32.mrb[2].mxu1  ;;  %v2126_v63 = vadd.f32 %v2125_v61, %v2124_v58  ;;  %v1927_v58 = vld [vmem:[%s4618_s5 + $0xc0] sm:$0xff]  ;;  %v1929_v61 = vld [vmem:[%s4618_s5 + $0xd0] sm:$0xff] }
 0x11a   :  { %v2160_v0 = vpop.f32.mrb[3].mxu1  ;;  %3090 = vmatpush3.bf16.msra.mxu0 %v3089_v57  ;;  %v3152_v57 = vpack.c.bf16 %v864_v55, %v863_v52  ;;  %v3131_v60 = vpack.c.bf16 %v1928_v59, %v1927_v58  ;;  %v1948_v52 = vld [vmem:[%s4618_s5 + $0x168] sm:$0xff] }
 0x11b   :  { %v2161_v2 = vadd.f32 %v2160_v0, %v2159_v62  ;;  %v416_v5 = vadd.f32 %v2126_v63, %v1864_v40  ;;  %3091 = vmatprep.subr.bf16.mxu0 %v3361_v17  ;;  %v1915_v40 = vld [vmem:[%s4616_s3 + $0x1e8] sm:$0xff]  ;;  %v1930_v62 = vld [vmem:[%s4618_s5 + $0xd8] sm:$0xff]  ;;  %v1931_v0 = vld [vmem:[%s4618_s5 + $0xe0] sm:$0xff]  ;;  %v3185_v55 = vpack.c.bf16 %v1948_v52, %v1947_v51 }
 0x11c   :  { %v3113_v41 = vpack.c.bf16 %v1915_v40, %v1914_v37  ;;  %v3134_v63 = vpack.c.bf16 %v1930_v62, %v1929_v61  ;;  %v1953_v61 = vld [vmem:[%s4620_s7 + $0x88] sm:$0xff] }
 0x11d   :  { %v486_v6 = vadd.f32 %v2161_v2, %v416_v5  ;;  %v1932_v2 = vld [vmem:[%s4618_s5 + $0xe8] sm:$0xff] }
 0x11e   :  { %3093 = vmatpush3.bf16.msra.mxu0 %v3092_v4  ;;  %v865_v4 = vld [vmem:[%s4618_s5 + $0x40] sm:$0xff]  ;;  %v866_v5 = vld [vmem:[%s4618_s5 + $0x48] sm:$0xff] }
 0x11f   :  { %v489_v9 = vmax.f32 %v486_v6, 0.0  ;;  %3118 = vmatprep.subr.bf16.mxu0 %v3361_v17  ;;  %v3137_v6 = vpack.c.bf16 %v1932_v2, %v1931_v0  ;;  %v1955_v0 = vld [vmem:[%s4620_s7 + $0x98] sm:$0xff]  ;;  %v1131_v2 = vld [vmem:[%s4620_s7] sm:$0xff] }
 0x121   :  { %491 = vst [vmem:[#allocation2 + $0x12] sm:$0xff] %v489_v9  ;;  %2504 = vmatmul.mubr.f32.vlgmr.msra.gmra.mrb[6].mxu0 %v489_v9  ;;  %v3155_v9 = vpack.c.bf16 %v866_v5, %v865_v4  ;;  %v1132_v4 = vld [vmem:[%s4620_s7 + $0x8] sm:$0xff] }
 0x122   :  { %2573 = vmatprep.mubr.msk.f32.mxu0 %vm3362_vm0, %v3363_v1  ;;  %3120 = vmatpush3.bf16.msra.mxu0 %v3119_v53  ;;  %v1937_v53 = vld [vmem:[%s4618_s5 + $0x110] sm:$0xff] }
 0x123   :  { %3121 = vmatprep.subr.bf16.mxu0 %v3361_v17  ;;  %v3170_v3 = vpack.c.bf16 %v1938_v54, %v1937_v53  ;;  %v1142_v53 = vld [vmem:[%s4620_s7 + $0x58] sm:$0xff] }
 0x126   :  { %3123 = vmatpush3.bf16.msra.mxu0 %v3122_v21  ;;  %v1942_v21 = vld [vmem:[%s4618_s5 + $0x138] sm:$0xff] }
 0x127   :  { %3124 = vmatprep.subr.bf16.mxu0 %v3361_v17  ;;  %v3176_v26 = vpack.c.bf16 %v1942_v21, %v1941_v16  ;;  %v1145_v16 = vld [vmem:[%s4620_s7 + $0x70] sm:$0xff]  ;;  %v1146_v21 = vld [vmem:[%s4620_s7 + $0x78] sm:$0xff] }
 0x128   :  { %v492_v18 = vld [vmem:[#allocation2 + $0x10] sm:$0xff] }
 0x129   :  { %2469 = vmatmul.mubr.f32.vlgmr.msra.gmra.mrb[4].mxu1 %v492_v18 }
 0x12a   :  { %3096 = vmatpush3.bf16.msra.mxu1 %v3095_v13  ;;  %2538 = vmatprep.mubr.msk.f32.mxu1 %vm3362_vm0, %v3363_v1  ;;  %v867_v13 = vld [vmem:[%s4618_s5 + $0x50] sm:$0xff] }
 0x12b   :  { %3097 = vmatprep.subr.bf16.mxu1 %v3361_v17  ;;  %3126 = vmatpush3.bf16.msra.mxu0 %v3125_v39  ;;  %v3158_v18 = vpack.c.bf16 %v868_v14, %v867_v13  ;;  %v1945_v39 = vld [vmem:[%s4618_s5 + $0x150] sm:$0xff]  ;;  %v1957_v13 = vld [vmem:[%s4620_s7 + $0xa8] sm:$0xff] }
 0x12c   :  { %3127 = vmatprep.subr.bf16.mxu0 %v3361_v17  ;;  %v3197_v14 = vpack.c.bf16 %v1957_v13, %v1956_v11  ;;  %v1977_v11 = vld [vmem:[%s4620_s7 + $0x148] sm:$0xff] }
 0x12e   :  { %3099 = vmatpush3.bf16.msra.mxu1 %v3098_v19  ;;  %v869_v19 = vld [vmem:[%s4618_s5 + $0x60] sm:$0xff] }
 0x12f   :  { %3100 = vmatprep.subr.bf16.mxu1 %v3361_v17  ;;  %3129 = vmatpush3.bf16.msra.mxu0 %v3128_v56  ;;  %v3161_v22 = vpack.c.bf16 %v870_v20, %v869_v19  ;;  %v1949_v56 = vld [vmem:[%s4618_s5 + $0x170] sm:$0xff]  ;;  %v1959_v19 = vld [vmem:[%s4620_s7 + $0xb8] sm:$0xff]  ;;  %v1135_v20 = vld [vmem:[%s4620_s7 + $0x20] sm:$0xff] }
 0x130   :  { %3130 = vmatprep.subr.bf16.mxu0 %v3361_v17 }
 0x132   :  { %3102 = vmatpush3.bf16.msra.mxu1 %v3101_v23  ;;  %v871_v23 = vld [vmem:[%s4618_s5 + $0x70] sm:$0xff] }
 0x133   :  { %3103 = vmatprep.subr.bf16.mxu1 %v3361_v17  ;;  %3132 = vmatpush3.bf16.msra.mxu0 %v3131_v60  ;;  %v3164_v27 = vpack.c.bf16 %v872_v24, %v871_v23  ;;  %v1952_v60 = vld [vmem:[%s4620_s7 + $0x80] sm:$0xff] }
 0x134   :  { %3133 = vmatprep.subr.bf16.mxu0 %v3361_v17  ;;  %v3191_v62 = vpack.c.bf16 %v1953_v61, %v1952_v60  ;;  %v1970_v60 = vld [vmem:[%s4620_s7 + $0x110] sm:$0xff]  ;;  %v1971_v61 = vld [vmem:[%s4620_s7 + $0x118] sm:$0xff] }
 0x136   :  { %3105 = vmatpush3.bf16.msra.mxu1 %v3104_v28 }
 0x137   :  { %3106 = vmatprep.subr.bf16.mxu1 %v3361_v17  ;;  %3135 = vmatpush3.bf16.msra.mxu0 %v3134_v63  ;;  %v1954_v63 = vld [vmem:[%s4620_s7 + $0x90] sm:$0xff] }
 0x138   :  { %3136 = vmatprep.subr.bf16.mxu0 %v3361_v17  ;;  %v3194_v5 = vpack.c.bf16 %v1955_v0, %v1954_v63  ;;  %v1972_v63 = vld [vmem:[%s4620_s7 + $0x120] sm:$0xff]  ;;  %v1973_v0 = vld [vmem:[%s4620_s7 + $0x128] sm:$0xff] }
 0x13a   :  { %3108 = vmatpush3.bf16.msra.mxu1 %v3107_v31 }
 0x13b   :  { %3109 = vmatprep.subr.bf16.mxu1 %v3361_v17  ;;  %3138 = vmatpush3.bf16.msra.mxu0 %v3137_v6  ;;  %v1133_v6 = vld [vmem:[%s4620_s7 + $0x10] sm:$0xff] }
 0x13c   :  { %3139 = vmatprep.subr.bf16.mxu0 %v3361_v17 }
 0x13e   :  { %3111 = vmatpush3.bf16.msra.mxu1 %v3110_v36 }
 0x13f   :  { %3112 = vmatprep.subr.bf16.mxu1 %v3361_v17  ;;  %3141 = vmatpush3.bf16.msra.mxu0 %v3140_v15  ;;  %v3218_v15 = vpack.c.bf16 %v1134_v10, %v1133_v6  ;;  %v1976_v10 = vld [vmem:[%s4620_s7 + $0x140] sm:$0xff] }
 0x140   :  { %3166 = vmatprep.subr.bf16.mxu0 %v3361_v17  ;;  %v3251_v13 = vpack.c.bf16 %v1977_v11, %v1976_v10  ;;  %v1504_v10 = vld [vmem:[%s4623_s11 + $0x38] sm:$0xff] }
 0x142   :  { %3114 = vmatpush3.bf16.msra.mxu1 %v3113_v41  ;;  %v1918_v41 = vld [vmem:[%s4619_s4] ss:$0 sm:$0xff] }
 0x143   :  { %3115 = vmatprep.subr.bf16.mxu1 %v3361_v17 }
 0x146   :  { %3117 = vmatpush3.bf16.msra.mxu1 %v3116_v45  ;;  %v1935_v45 = vld [vmem:[%s4618_s5 + $0x100] sm:$0xff] }
 0x147   :  { %3142 = vmatprep.subr.bf16.mxu1 %v3361_v17 }
 0x149   :  { %2539 = vmatmul.mubr.f32.vlgmr.msra.gmra.mrb[6].mxu1 %v756_v46  ;;  %v1936_v46 = vld [vmem:[%s4618_s5 + $0x108] sm:$0xff] }
 0x14a   :  { %2608 = vmatprep.mubr.msk.f32.mxu1 %vm3362_vm0, %v3363_v1  ;;  %3144 = vmatpush3.bf16.msra.mxu1 %v3143_v8  ;;  %v3167_v49 = vpack.c.bf16 %v1936_v46, %v1935_v45  ;;  %v1940_v8 = vld [vmem:[%s4618_s5 + $0x128] sm:$0xff] }
 0x14b   :  { %3145 = vmatprep.subr.bf16.mxu1 %v3361_v17  ;;  %v3173_v12 = vpack.c.bf16 %v1940_v8, %v1939_v7  ;;  %v1143_v7 = vld [vmem:[%s4620_s7 + $0x60] sm:$0xff]  ;;  %v1144_v8 = vld [vmem:[%s4620_s7 + $0x68] sm:$0xff] }
 0x14e   :  { %3147 = vmatpush3.bf16.msra.mxu1 %v3146_v25 }
 0x14f   :  { %3148 = vmatprep.subr.bf16.mxu1 %v3361_v17 }
 0x152   :  { %3150 = vmatpush3.bf16.msra.mxu1 %v3149_v43  ;;  %v1946_v43 = vld [vmem:[%s4618_s5 + $0x158] sm:$0xff] }
 0x153   :  { %3151 = vmatprep.subr.bf16.mxu1 %v3361_v17  ;;  %v3182_v48 = vpack.c.bf16 %v1946_v43, %v1945_v39  ;;  %v1951_v43 = vld [vmem:[%s4621_s6] ss:$0 sm:$0xff] }
 0x156   :  { %3153 = vmatpush3.bf16.msra.mxu1 %v3152_v57  ;;  %v1950_v57 = vld [vmem:[%s4618_s5 + $0x178] sm:$0xff] }
 0x157   :  { %3154 = vmatprep.subr.bf16.mxu1 %v3361_v17  ;;  %v3188_v58 = vpack.c.bf16 %v1950_v57, %v1949_v56  ;;  %v1969_v56 = vld [vmem:[%s4620_s7 + $0x108] sm:$0xff] }
 0x15a   :  { %3156 = vmatpush3.bf16.msra.mxu1 %v3155_v9  ;;  %v3215_v9 = vpack.c.bf16 %v1132_v4, %v1131_v2  ;;  %v3245_v2 = vpack.c.bf16 %v1973_v0, %v1972_v63  ;;  %v1974_v4 = vld [vmem:[%s4620_s7 + $0x130] sm:$0xff]  ;;  %v1500_v0 = vld [vmem:[%s4623_s11 + $0x18] sm:$0xff] }
 0x15b   :  { %3157 = vmatprep.subr.bf16.mxu1 %v3361_v17  ;;  %v1499_v63 = vld [vmem:[%s4623_s11 + $0x10] sm:$0xff] }
 0x15e   :  { %3159 = vmatpush3.bf16.msra.mxu1 %v3158_v18  ;;  %v1958_v18 = vld [vmem:[%s4620_s7 + $0xb0] sm:$0xff] }
 0x15f   :  { %3160 = vmatprep.subr.bf16.mxu1 %v3361_v17  ;;  %v3200_v23 = vpack.c.bf16 %v1959_v19, %v1958_v18  ;;  %v1980_v19 = vld [vmem:[%s4620_s7 + $0x160] sm:$0xff] }
 0x162   :  { %3162 = vmatpush3.bf16.msra.mxu1 %v3161_v22  ;;  %v1136_v22 = vld [vmem:[%s4620_s7 + $0x28] sm:$0xff] }
 0x163   :  { %3163 = vmatprep.subr.bf16.mxu1 %v3361_v17  ;;  %v3221_v24 = vpack.c.bf16 %v1136_v22, %v1135_v20  ;;  %v1981_v20 = vld [vmem:[%s4620_s7 + $0x168] sm:$0xff] }
 0x164   :  { %v3257_v22 = vpack.c.bf16 %v1981_v20, %v1980_v19  ;;  %v2000_v19 = vld [vmem:[%s4623_s11 + $0xe8] sm:$0xff]  ;;  %v1505_v20 = vld [vmem:[%s4623_s11 + $0x40] sm:$0xff] }
 0x166   :  { %3165 = vmatpush3.bf16.msra.mxu1 %v3164_v27  ;;  %v1960_v27 = vld [vmem:[%s4620_s7 + $0xc0] sm:$0xff] }
 0x167   :  { %3190 = vmatprep.subr.bf16.mxu1 %v3361_v17 }
 0x1d4   :  { %v593_v28 = vpop.f32.mrb[4].mxu0 }
 0x1d5   :  { %v2435_v29 = vpop.f32.mrb[5].mxu0 }
 0x1d6   :  { %v1137_v29 = vld [vmem:[%s4620_s7 + $0x30] sm:$0xff] }
 0x1f4   :  { %v751_v30 = vpop.f32.mrb[6].mxu0 }
 0x1f5   :  { %v2505_v31 = vpop.f32.mrb[7].mxu0 }
 0x1fc   :  { %v663_v32 = vpop.f32.mrb[4].mxu1 }
 0x1fd   :  { %v664_v35 = vadd.f32 %v663_v32, %v593_v28  ;;  %v2470_v36 = vpop.f32.mrb[5].mxu1  ;;  %v1961_v28 = vld [vmem:[%s4620_s7 + $0xc8] sm:$0xff] }
 0x1fe   :  { %v3203_v31 = vpack.c.bf16 %v1961_v28, %v1960_v27  ;;  %v1963_v36 = vld [vmem:[%s4620_s7 + $0xd8] sm:$0xff] }
 0x1ff   :  { %v755_v37 = vadd.f32 %v751_v30, %v664_v35  ;;  %v1138_v30 = vld [vmem:[%s4620_s7 + $0x38] sm:$0xff]  ;;  %v1962_v35 = vld [vmem:[%s4620_s7 + $0xd0] sm:$0xff] }
 0x200   :  { %v3224_v32 = vpack.c.bf16 %v1138_v30, %v1137_v29  ;;  %v1402_v29 = vld [vmem:[%s4622_s9] sm:$0xff]  ;;  %v1403_v30 = vld [vmem:[%s4622_s9 + $0x8] sm:$0xff] }
 0x21c   :  { %v840_v40 = vpop.f32.mrb[6].mxu1 }
 0x21d   :  { %v844_v42 = vadd.f32 %v840_v40, %v755_v37  ;;  %v2540_v44 = vpop.f32.mrb[7].mxu1  ;;  %v3206_v37 = vpack.c.bf16 %v1963_v36, %v1962_v35  ;;  %v1964_v40 = vld [vmem:[%s4620_s7 + $0xe0] sm:$0xff]  ;;  %v1405_v35 = vld [vmem:[%s4622_s9 + $0x18] sm:$0xff] }
 0x21e   :  { %v1140_v44 = vld [vmem:[%s4620_s7 + $0x48] sm:$0xff] }
 0x21f   :  { %v852_v47 = vadd.f32 %v1918_v41, %v844_v42  ;;  %v1965_v41 = vld [vmem:[%s4620_s7 + $0xe8] sm:$0xff]  ;;  %v1139_v42 = vld [vmem:[%s4620_s7 + $0x40] sm:$0xff] }
 0x220   :  { %v3209_v45 = vpack.c.bf16 %v1965_v41, %v1964_v40  ;;  %v3227_v46 = vpack.c.bf16 %v1140_v44, %v1139_v42  ;;  %v1407_v40 = vld [vmem:[%s4622_s9 + $0x28] sm:$0xff]  ;;  %v1408_v42 = vld [vmem:[%s4622_s9 + $0x30] sm:$0xff]  ;;  %v1409_v44 = vld [vmem:[%s4622_s9 + $0x38] sm:$0xff] }
 0x221   :  { %v853_v50 = vmax.f32 %v852_v47, 0.0  ;;  %v1966_v47 = vld [vmem:[%s4620_s7 + $0xf0] sm:$0xff] }
 0x223   :  { %854 = vst [vmem:[#allocation3 + $0x2] sm:$0xff] %v853_v50  ;;  %2574 = vmatmul.mubr.f32.vlgmr.msra.gmra.mrb[8].mxu0 %v853_v50  ;;  %v1141_v50 = vld [vmem:[%s4620_s7 + $0x50] sm:$0xff] }
 0x224   :  { %3168 = vmatpush3.bf16.msra.mxu0 %v3167_v49  ;;  %2643 = vmatprep.mubr.msk.f32.mxu0 %vm3362_vm0, %v3363_v1  ;;  %v1967_v49 = vld [vmem:[%s4620_s7 + $0xf8] sm:$0xff] }
 0x225   :  { %3169 = vmatprep.subr.bf16.mxu0 %v3361_v17  ;;  %v3212_v54 = vpack.c.bf16 %v1967_v49, %v1966_v47  ;;  %v1988_v47 = vld [vmem:[%s4623_s11 + $0x88] sm:$0xff] }
 0x228   :  { %3171 = vmatpush3.bf16.msra.mxu0 %v3170_v3  ;;  %v3230_v3 = vpack.c.bf16 %v1142_v53, %v1141_v50  ;;  %v1989_v50 = vld [vmem:[%s4623_s11 + $0x90] sm:$0xff]  ;;  %v1990_v53 = vld [vmem:[%s4623_s11 + $0x98] sm:$0xff] }
 0x229   :  { %3172 = vmatprep.subr.bf16.mxu0 %v3361_v17 }
 0x22a   :  { %v856_v25 = vld [vmem:[#allocation3] sm:$0xff] }
 0x22b   :  { %2609 = vmatmul.mubr.f32.vlgmr.msra.gmra.mrb[8].mxu1 %v856_v25  ;;  %v1031_v59 = vld [vmem:[#allocation3 + $0x4] sm:$0xff]  ;;  %v3236_v25 = vpack.c.bf16 %v1146_v21, %v1145_v16  ;;  %v1994_v16 = vld [vmem:[%s4623_s11 + $0xb8] sm:$0xff] }
 0x22c   :  { %3174 = vmatpush3.bf16.msra.mxu0 %v3173_v12  ;;  %2678 = vmatprep.mubr.msk.f32.mxu1 %vm3362_vm0, %v3363_v1  ;;  %v3233_v12 = vpack.c.bf16 %v1144_v8, %v1143_v7  ;;  %v1992_v7 = vld [vmem:[%s4623_s11 + $0xa8] sm:$0xff] }
 0x22d   :  { %3175 = vmatprep.subr.bf16.mxu0 %v3361_v17  ;;  %3192 = vmatpush3.bf16.msra.mxu1 %v3191_v62  ;;  %v3242_v62 = vpack.c.bf16 %v1971_v61, %v1970_v60 }
 0x22e   :  { %3193 = vmatprep.subr.bf16.mxu1 %v3361_v17 }
 0x230   :  { %3177 = vmatpush3.bf16.msra.mxu0 %v3176_v26 }
 0x231   :  { %3178 = vmatprep.subr.bf16.mxu0 %v3361_v17  ;;  %3195 = vmatpush3.bf16.msra.mxu1 %v3194_v5  ;;  %v1975_v5 = vld [vmem:[%s4620_s7 + $0x138] sm:$0xff] }
 0x232   :  { %3196 = vmatprep.subr.bf16.mxu1 %v3361_v17 }
 0x234   :  { %3180 = vmatpush3.bf16.msra.mxu0 %v3179_v38 }
 0x235   :  { %3181 = vmatprep.subr.bf16.mxu0 %v3361_v17  ;;  %3198 = vmatpush3.bf16.msra.mxu1 %v3197_v14  ;;  %v1978_v14 = vld [vmem:[%s4620_s7 + $0x150] sm:$0xff] }
 0x236   :  { %3199 = vmatprep.subr.bf16.mxu1 %v3361_v17 }
 0x238   :  { %3183 = vmatpush3.bf16.msra.mxu0 %v3182_v48 }
 0x239   :  { %3184 = vmatprep.subr.bf16.mxu0 %v3361_v17  ;;  %3201 = vmatpush3.bf16.msra.mxu1 %v3200_v23  ;;  %v1982_v23 = vld [vmem:[%s4620_s7 + $0x170] sm:$0xff] }
 0x23a   :  { %3202 = vmatprep.subr.bf16.mxu1 %v3361_v17 }
 0x23c   :  { %3186 = vmatpush3.bf16.msra.mxu0 %v3185_v55  ;;  %v1968_v55 = vld [vmem:[%s4620_s7 + $0x100] sm:$0xff] }
 0x23d   :  { %3187 = vmatprep.subr.bf16.mxu0 %v3361_v17  ;;  %3204 = vmatpush3.bf16.msra.mxu1 %v3203_v31  ;;  %v1404_v31 = vld [vmem:[%s4622_s9 + $0x10] sm:$0xff] }
 0x23e   :  { %3205 = vmatprep.subr.bf16.mxu1 %v3361_v17  ;;  %v3266_v36 = vpack.c.bf16 %v1405_v35, %v1404_v31  ;;  %v1509_v35 = vld [vmem:[%s4623_s11 + $0x60] sm:$0xff] }
 0x240   :  { %3189 = vmatpush3.bf16.msra.mxu0 %v3188_v58  ;;  %v3239_v58 = vpack.c.bf16 %v1969_v56, %v1968_v55 }
 0x241   :  { %3214 = vmatprep.subr.bf16.mxu0 %v3361_v17  ;;  %3207 = vmatpush3.bf16.msra.mxu1 %v3206_v37  ;;  %v1406_v37 = vld [vmem:[%s4622_s9 + $0x20] sm:$0xff] }
 0x242   :  { %3208 = vmatprep.subr.bf16.mxu1 %v3361_v17  ;;  %v3269_v41 = vpack.c.bf16 %v1407_v40, %v1406_v37  ;;  %v1511_v40 = vld [vmem:[%s4623_s11 + $0x70] sm:$0xff] }
 0x243   :  { %2644 = vmatmul.mubr.f32.vlgmr.msra.gmra.mrb[10].mxu0 %v1031_v59 }
 0x244   :  { %2713 = vmatprep.mubr.msk.f32.mxu0 %vm3362_vm0, %v3363_v1  ;;  %3216 = vmatpush3.bf16.msra.mxu0 %v3215_v9  ;;  %v3248_v9 = vpack.c.bf16 %v1975_v5, %v1974_v4  ;;  %v1501_v4 = vld [vmem:[%s4623_s11 + $0x20] sm:$0xff]  ;;  %v1502_v5 = vld [vmem:[%s4623_s11 + $0x28] sm:$0xff] }
 0x245   :  { %3217 = vmatprep.subr.bf16.mxu0 %v3361_v17  ;;  %3210 = vmatpush3.bf16.msra.mxu1 %v3209_v45  ;;  %v3272_v45 = vpack.c.bf16 %v1409_v44, %v1408_v42 }
 0x246   :  { %3211 = vmatprep.subr.bf16.mxu1 %v3361_v17 }
 0x248   :  { %3219 = vmatpush3.bf16.msra.mxu0 %v3218_v15  ;;  %v1979_v15 = vld [vmem:[%s4620_s7 + $0x158] sm:$0xff] }
 0x249   :  { %3220 = vmatprep.subr.bf16.mxu0 %v3361_v17  ;;  %3213 = vmatpush3.bf16.msra.mxu1 %v3212_v54  ;;  %v3254_v18 = vpack.c.bf16 %v1979_v15, %v1978_v14  ;;  %v3278_v54 = vpack.c.bf16 %v1990_v53, %v1989_v50  ;;  %v1998_v14 = vld [vmem:[%s4623_s11 + $0xd8] sm:$0xff]  ;;  %v2004_v50 = vld [vmem:[%s4623_s11 + $0x108] sm:$0xff] }
 0x24a   :  { %3238 = vmatprep.subr.bf16.mxu1 %v3361_v17 }
 0x24c   :  { %3222 = vmatpush3.bf16.msra.mxu0 %v3221_v24  ;;  %v1983_v24 = vld [vmem:[%s4620_s7 + $0x178] sm:$0xff] }
 0x24d   :  { %3223 = vmatprep.subr.bf16.mxu0 %v3361_v17  ;;  %v3260_v27 = vpack.c.bf16 %v1983_v24, %v1982_v23 }
 0x250   :  { %3225 = vmatpush3.bf16.msra.mxu0 %v3224_v32  ;;  %v3263_v32 = vpack.c.bf16 %v1403_v30, %v1402_v29  ;;  %v1507_v29 = vld [vmem:[%s4623_s11 + $0x50] sm:$0xff]  ;;  %v1508_v30 = vld [vmem:[%s4623_s11 + $0x58] sm:$0xff] }
 0x251   :  { %3226 = vmatprep.subr.bf16.mxu0 %v3361_v17 }
 0x254   :  { %3228 = vmatpush3.bf16.msra.mxu0 %v3227_v46  ;;  %v1987_v46 = vld [vmem:[%s4623_s11 + $0x80] sm:$0xff] }
 0x255   :  { %3229 = vmatprep.subr.bf16.mxu0 %v3361_v17  ;;  %v3275_v49 = vpack.c.bf16 %v1988_v47, %v1987_v46 }
 0x258   :  { %3231 = vmatpush3.bf16.msra.mxu0 %v3230_v3  ;;  %v1991_v3 = vld [vmem:[%s4623_s11 + $0xa0] sm:$0xff] }
 0x259   :  { %3232 = vmatprep.subr.bf16.mxu0 %v3361_v17  ;;  %v3281_v8 = vpack.c.bf16 %v1992_v7, %v1991_v3  ;;  %v2005_v7 = vld [vmem:[%s4623_s11 + $0x110] sm:$0xff] }
 0x25c   :  { %3234 = vmatpush3.bf16.msra.mxu0 %v3233_v12  ;;  %v1993_v12 = vld [vmem:[%s4623_s11 + $0xb0] sm:$0xff] }
 0x25d   :  { %3235 = vmatprep.subr.bf16.mxu0 %v3361_v17  ;;  %v3284_v21 = vpack.c.bf16 %v1994_v16, %v1993_v12  ;;  %v2007_v12 = vld [vmem:[%s4623_s11 + $0x120] sm:$0xff]  ;;  %v2008_v16 = vld [vmem:[%s4623_s11 + $0x128] sm:$0xff] }
 0x260   :  { %3237 = vmatpush3.bf16.msra.mxu0 %v3236_v25  ;;  %v1995_v25 = vld [vmem:[%s4623_s11 + $0xc0] sm:$0xff] }
 0x261   :  { %3262 = vmatprep.subr.bf16.mxu0 %v3361_v17 }
 0x2f6   :  { %v957_v26 = vpop.f32.mrb[8].mxu0 }
 0x2f7   :  { %v2575_v33 = vpop.f32.mrb[9].mxu0 }
 0x2fe   :  { %v1027_v34 = vpop.f32.mrb[8].mxu1 }
 0x2ff   :  { %v1028_v38 = vadd.f32 %v1027_v34, %v957_v26  ;;  %v2610_v39 = vpop.f32.mrb[9].mxu1  ;;  %v1996_v26 = vld [vmem:[%s4623_s11 + $0xc8] sm:$0xff] }
 0x300   :  { %v3287_v33 = vpack.c.bf16 %v1996_v26, %v1995_v25  ;;  %v2009_v25 = vld [vmem:[%s4623_s11 + $0x130] sm:$0xff]  ;;  %v2010_v26 = vld [vmem:[%s4623_s11 + $0x138] sm:$0xff] }
 0x316   :  { %v1115_v48 = vpop.f32.mrb[10].mxu0 }
 0x317   :  { %v1119_v51 = vadd.f32 %v1115_v48, %v1028_v38  ;;  %v2645_v52 = vpop.f32.mrb[11].mxu0 }
 0x319   :  { %v1126_v57 = vadd.f32 %v1951_v43, %v1119_v51  ;;  %v1984_v51 = vld [vmem:[%s4624_s8] ss:$0 sm:$0xff] }
 0x31b   :  { %v4303_v59 = vmax.f32 %v1126_v57, 0.0  ;;  %v1497_v57 = vld [vmem:[%s4623_s11] sm:$0xff] }
 0x31d   :  { %1128 = vst [vmem:[#allocation3 + $0x2] sm:$0xff] %v4303_v59  ;;  %2679 = vmatmul.mubr.f32.vlgmr.msra.gmra.mrb[10].mxu1 %v4303_v59 }
 0x31e   :  { %3240 = vmatpush3.bf16.msra.mxu1 %v3239_v58  ;;  %2748 = vmatprep.mubr.msk.f32.mxu1 %vm3362_vm0, %v3363_v1  ;;  %v1498_v58 = vld [vmem:[%s4623_s11 + $0x8] sm:$0xff] }
 0x31f   :  { %3241 = vmatprep.subr.bf16.mxu1 %v3361_v17  ;;  %v3299_v61 = vpack.c.bf16 %v1498_v58, %v1497_v57  ;;  %v2017_v57 = vld [vmem:[%s4623_s11 + $0x170] sm:$0xff]  ;;  %v2018_v58 = vld [vmem:[%s4623_s11 + $0x178] sm:$0xff] }
 0x322   :  { %3243 = vmatpush3.bf16.msra.mxu1 %v3242_v62 }
 0x323   :  { %3244 = vmatprep.subr.bf16.mxu1 %v3361_v17 }
 0x324   :  { %v1130_v6 = vld [vmem:[#allocation3] sm:$0xff] }
 0x325   :  { %2714 = vmatmul.mubr.f32.vlgmr.msra.gmra.mrb[12].mxu0 %v1130_v6  ;;  %v1305_v28 = vld [vmem:[#allocation3 + $0x4] sm:$0xff]  ;;  %v3305_v6 = vpack.c.bf16 %v1502_v5, %v1501_v4  ;;  %v1771_v4 = vld [vmem:[%s4626_s13 + $0x18] sm:$0xff] }
 0x326   :  { %3246 = vmatpush3.bf16.msra.mxu1 %v3245_v2  ;;  %2767 = vmatprep.mubr.msk.f32.mxu0 %vm3362_vm0, %v3363_v1  ;;  %v3302_v2 = vpack.c.bf16 %v1500_v0, %v1499_v63  ;;  %v1769_v63 = vld [vmem:[%s4626_s13 + $0x8] sm:$0xff]  ;;  %v1770_v0 = vld [vmem:[%s4626_s13 + $0x10] sm:$0xff] }
 0x327   :  { %3247 = vmatprep.subr.bf16.mxu1 %v3361_v17  ;;  %3264 = vmatpush3.bf16.msra.mxu0 %v3263_v32  ;;  %v3314_v32 = vpack.c.bf16 %v1508_v30, %v1507_v29  ;;  %v3350_v5 = vpack.c.bf16 %v1771_v4, %v1770_v0 }
 0x328   :  { %3265 = vmatprep.subr.bf16.mxu0 %v3361_v17 }
 0x32a   :  { %3249 = vmatpush3.bf16.msra.mxu1 %v3248_v9  ;;  %v1503_v9 = vld [vmem:[%s4623_s11 + $0x30] sm:$0xff] }
 0x32b   :  { %3250 = vmatprep.subr.bf16.mxu1 %v3361_v17  ;;  %3267 = vmatpush3.bf16.msra.mxu0 %v3266_v36  ;;  %v3308_v11 = vpack.c.bf16 %v1504_v10, %v1503_v9  ;;  %v1510_v36 = vld [vmem:[%s4623_s11 + $0x68] sm:$0xff] }
 0x32c   :  { %3268 = vmatprep.subr.bf16.mxu0 %v3361_v17  ;;  %v3317_v37 = vpack.c.bf16 %v1510_v36, %v1509_v35  ;;  %v1773_v9 = vld [vmem:[%s4626_s13 + $0x28] sm:$0xff] }
 0x32e   :  { %3252 = vmatpush3.bf16.msra.mxu1 %v3251_v13  ;;  %v1997_v13 = vld [vmem:[%s4623_s11 + $0xd0] sm:$0xff] }
 0x32f   :  { %3253 = vmatprep.subr.bf16.mxu1 %v3361_v17  ;;  %3270 = vmatpush3.bf16.msra.mxu0 %v3269_v41  ;;  %v3290_v15 = vpack.c.bf16 %v1998_v14, %v1997_v13  ;;  %v1512_v41 = vld [vmem:[%s4623_s11 + $0x78] sm:$0xff] }
 0x330   :  { %3271 = vmatprep.subr.bf16.mxu0 %v3361_v17  ;;  %v3320_v42 = vpack.c.bf16 %v1512_v41, %v1511_v40  ;;  %v1775_v13 = vld [vmem:[%s4626_s13 + $0x38] sm:$0xff] }
 0x332   :  { %3255 = vmatpush3.bf16.msra.mxu1 %v3254_v18  ;;  %v1999_v18 = vld [vmem:[%s4623_s11 + $0xe0] sm:$0xff] }
 0x333   :  { %3256 = vmatprep.subr.bf16.mxu1 %v3361_v17  ;;  %3273 = vmatpush3.bf16.msra.mxu0 %v3272_v45  ;;  %v3293_v23 = vpack.c.bf16 %v2000_v19, %v1999_v18  ;;  %v1986_v45 = vld [vmem:[%s4625_s10] ss:$0 sm:$0xff] }
 0x334   :  { %3298 = vmatprep.subr.bf16.mxu0 %v3361_v17 }
 0x336   :  { %3258 = vmatpush3.bf16.msra.mxu1 %v3257_v22  ;;  %v1506_v22 = vld [vmem:[%s4623_s11 + $0x48] sm:$0xff] }
 0x337   :  { %3259 = vmatprep.subr.bf16.mxu1 %v3361_v17  ;;  %v3311_v24 = vpack.c.bf16 %v1506_v22, %v1505_v20 }
 0x33a   :  { %3261 = vmatpush3.bf16.msra.mxu1 %v3260_v27  ;;  %v2001_v27 = vld [vmem:[%s4623_s11 + $0xf0] sm:$0xff] }
 0x33b   :  { %3274 = vmatprep.subr.bf16.mxu1 %v3361_v17 }
 0x33d   :  { %2749 = vmatmul.mubr.f32.vlgmr.msra.gmra.mrb[12].mxu1 %v1305_v28  ;;  %v2002_v28 = vld [vmem:[%s4623_s11 + $0xf8] sm:$0xff] }
 0x33e   :  { %2802 = vmatprep.mubr.msk.f32.mxu1 %vm3362_vm0, %v3363_v1  ;;  %3276 = vmatpush3.bf16.msra.mxu1 %v3275_v49  ;;  %v3296_v31 = vpack.c.bf16 %v2002_v28, %v2001_v27  ;;  %v2003_v49 = vld [vmem:[%s4623_s11 + $0x100] sm:$0xff] }
 0x33f   :  { %3277 = vmatprep.subr.bf16.mxu1 %v3361_v17 }
 0x342   :  { %3279 = vmatpush3.bf16.msra.mxu1 %v3278_v54  ;;  %v3323_v54 = vpack.c.bf16 %v2004_v50, %v2003_v49 }
 0x343   :  { %3280 = vmatprep.subr.bf16.mxu1 %v3361_v17 }
 0x346   :  { %3282 = vmatpush3.bf16.msra.mxu1 %v3281_v8 }
 0x347   :  { %3283 = vmatprep.subr.bf16.mxu1 %v3361_v17 }
 0x34a   :  { %3285 = vmatpush3.bf16.msra.mxu1 %v3284_v21  ;;  %v3329_v21 = vpack.c.bf16 %v2008_v16, %v2007_v12 }
 0x34b   :  { %3286 = vmatprep.subr.bf16.mxu1 %v3361_v17 }
 0x34e   :  { %3288 = vmatpush3.bf16.msra.mxu1 %v3287_v33 }
 0x34f   :  { %3289 = vmatprep.subr.bf16.mxu1 %v3361_v17 }
 0x352   :  { %3291 = vmatpush3.bf16.msra.mxu1 %v3290_v15 }
 0x353   :  { %3292 = vmatprep.subr.bf16.mxu1 %v3361_v17 }
 0x356   :  { %3294 = vmatpush3.bf16.msra.mxu1 %v3293_v23  ;;  %v2019_v23 = vld [vmem:[%s4627_s12] ss:$0 sm:$0xff] }
 0x357   :  { %3295 = vmatprep.subr.bf16.mxu1 %v3361_v17 }
 0x35a   :  { %3297 = vmatpush3.bf16.msra.mxu1 %v3296_v31  ;;  %v2021_v31 = vld [vmem:[%s4628_s14] ss:$0 sm:$0xff] }
 0x35b   :  { %3322 = vmatprep.subr.bf16.mxu1 %v3361_v17 }
 0x3f0   :  { %v1231_v34 = vpop.f32.mrb[10].mxu1 }
 0x3f1   :  { %v2680_v38 = vpop.f32.mrb[11].mxu1 }
 0x3f2   :  { %v2011_v38 = vld [vmem:[%s4623_s11 + $0x140] sm:$0xff] }
 0x3f8   :  { %v1301_v39 = vpop.f32.mrb[12].mxu0 }
 0x3f9   :  { %v1302_v43 = vadd.f32 %v1301_v39, %v1231_v34  ;;  %v2715_v48 = vpop.f32.mrb[13].mxu0  ;;  %v3332_v34 = vpack.c.bf16 %v2010_v26, %v2009_v25  ;;  %v2012_v39 = vld [vmem:[%s4623_s11 + $0x148] sm:$0xff] }
 0x3fa   :  { %v2013_v48 = vld [vmem:[%s4623_s11 + $0x150] sm:$0xff] }
 0x410   :  { %v1389_v52 = vpop.f32.mrb[12].mxu1 }
 0x411   :  { %v1393_v55 = vadd.f32 %v1389_v52, %v1302_v43  ;;  %v2750_v56 = vpop.f32.mrb[13].mxu1  ;;  %v3335_v43 = vpack.c.bf16 %v2012_v39, %v2011_v38  ;;  %v2015_v52 = vld [vmem:[%s4623_s11 + $0x160] sm:$0xff] }
 0x413   :  { %v1400_v60 = vadd.f32 %v1984_v51, %v1393_v55  ;;  %v2016_v55 = vld [vmem:[%s4623_s11 + $0x168] sm:$0xff] }
 0x414   :  { %v3341_v56 = vpack.c.bf16 %v2016_v55, %v2015_v52 }
 0x415   :  { %v1401_v62 = vmax.f32 %v1400_v60, 0.0  ;;  %v3344_v60 = vpack.c.bf16 %v2018_v58, %v2017_v57 }
 0x417   :  { %2768 = vmatmul.mubr.msk.f32.vlgmr.msra.gmra.mrb[14].mxu0 %vm1410_vm1, %v1401_v62  ;;  %v1768_v62 = vld [vmem:[%s4626_s13] sm:$0xff] }
 0x418   :  { %3300 = vmatpush3.bf16.msra.mxu0 %v3299_v61  ;;  %2837 = vmatprep.mubr.msk.f32.mxu0 %vm3362_vm0, %v3363_v1 }
 0x419   :  { %3301 = vmatprep.subr.bf16.mxu0 %v3361_v17 }
 0x41c   :  { %3303 = vmatpush3.bf16.msra.mxu0 %v3302_v2  ;;  %v3347_v2 = vpack.c.bf16 %v1769_v63, %v1768_v62 }
 0x41d   :  { %3304 = vmatprep.subr.bf16.mxu0 %v3361_v17 }
 0x420   :  { %3306 = vmatpush3.bf16.msra.mxu0 %v3305_v6  ;;  %v1772_v6 = vld [vmem:[%s4626_s13 + $0x20] sm:$0xff] }
 0x421   :  { %3307 = vmatprep.subr.bf16.mxu0 %v3361_v17  ;;  %v3353_v10 = vpack.c.bf16 %v1773_v9, %v1772_v6 }
 0x424   :  { %3309 = vmatpush3.bf16.msra.mxu0 %v3308_v11  ;;  %v1774_v11 = vld [vmem:[%s4626_s13 + $0x30] sm:$0xff] }
 0x425   :  { %3310 = vmatprep.subr.bf16.mxu0 %v3361_v17  ;;  %v3356_v14 = vpack.c.bf16 %v1775_v13, %v1774_v11 }
 0x428   :  { %3312 = vmatpush3.bf16.msra.mxu0 %v3311_v24 }
 0x429   :  { %3313 = vmatprep.subr.bf16.mxu0 %v3361_v17 }
 0x42c   :  { %3315 = vmatpush3.bf16.msra.mxu0 %v3314_v32 }
 0x42d   :  { %3316 = vmatprep.subr.bf16.mxu0 %v3361_v17 }
 0x430   :  { %3318 = vmatpush3.bf16.msra.mxu0 %v3317_v37 }
 0x431   :  { %3319 = vmatprep.subr.bf16.mxu0 %v3361_v17 }
 0x434   :  { %3321 = vmatpush3.bf16.msra.mxu0 %v3320_v42 }
 0x435   :  { %3346 = vmatprep.subr.bf16.mxu0 %v3361_v17 }
 0x4ea   :  { %v1480_v44 = vpop.f32.mrb[14].mxu0 }
 0x4eb   :  { %v1484_v46 = vadd.f32 %v1480_v44, %v4303_v59  ;;  %v2769_v47 = vpop.f32.mrb[15].mxu0  ;;  %v2006_v59 = vld [vmem:[%s4623_s11 + $0x118] sm:$0xff] }
 0x4ec   :  { %v3326_v8 = vpack.c.bf16 %v2006_v59, %v2005_v7 }
 0x4ed   :  { %v1492_v53 = vadd.f32 %v1986_v45, %v1484_v46 }
 0x4ef   :  { %v4519_v3 = vmax.f32 %v1492_v53, 0.0 }
 0x4f1   :  { %1494 = vst [vmem:[#allocation3 + $0x2] sm:$0xff] %v4519_v3  ;;  %2803 = vmatmul.mubr.f32.vlgmr.msra.gmra.mrb[14].mxu1 %v4519_v3 }
 0x4f2   :  { %3324 = vmatpush3.bf16.msra.mxu1 %v3323_v54  ;;  %2872 = vmatprep.mubr.msk.f32.mxu1 %vm3362_vm0, %v3363_v1 }
 0x4f3   :  { %3325 = vmatprep.subr.bf16.mxu1 %v3361_v17 }
 0x4f6   :  { %3327 = vmatpush3.bf16.msra.mxu1 %v3326_v8 }
 0x4f7   :  { %3328 = vmatprep.subr.bf16.mxu1 %v3361_v17 }
 0x4f8   :  { %v1496_v33 = vld [vmem:[#allocation3] sm:$0xff] }
 0x4f9   :  { %2838 = vmatmul.mubr.f32.vlgmr.msra.gmra.mrb[16].mxu0 %v1496_v33  ;;  %v1671_v61 = vld [vmem:[#allocation3 + $0x4] sm:$0xff] }
 0x4fa   :  { %3330 = vmatpush3.bf16.msra.mxu1 %v3329_v21  ;;  %2891 = vmatprep.mubr.msk.f32.mxu0 %vm3362_vm0, %v3363_v1  ;;  %v2014_v1 = vld [vmem:[%s4623_s11 + $0x158] sm:$0xff] }
 0x4fb   :  { %3331 = vmatprep.subr.bf16.mxu1 %v3361_v17  ;;  %v3338_v51 = vpack.c.bf16 %v2014_v1, %v2013_v48  ;;  %3348 = vmatpush3.bf16.msra.mxu0 %v3347_v2 }
 0x4fc   :  { %3349 = vmatprep.subr.bf16.mxu0 %v3361_v17 }
 0x4fe   :  { %3333 = vmatpush3.bf16.msra.mxu1 %v3332_v34 }
 0x4ff   :  { %3334 = vmatprep.subr.bf16.mxu1 %v3361_v17  ;;  %3351 = vmatpush3.bf16.msra.mxu0 %v3350_v5 }
 0x500   :  { %3352 = vmatprep.subr.bf16.mxu0 %v3361_v17 }
 0x502   :  { %3336 = vmatpush3.bf16.msra.mxu1 %v3335_v43 }
 0x503   :  { %3337 = vmatprep.subr.bf16.mxu1 %v3361_v17  ;;  %3354 = vmatpush3.bf16.msra.mxu0 %v3353_v10 }
 0x504   :  { %3355 = vmatprep.subr.bf16.mxu0 %v3361_v17 }
 0x506   :  { %3339 = vmatpush3.bf16.msra.mxu1 %v3338_v51 }
 0x507   :  { %3340 = vmatprep.subr.bf16.mxu1 %v3361_v17  ;;  %3357 = vmatpush3.bf16.msra.mxu0 %v3356_v14 }
 0x50a   :  { %3342 = vmatpush3.bf16.msra.mxu1 %v3341_v56 }
 0x50b   :  { %3343 = vmatprep.subr.bf16.mxu1 %v3361_v17 }
 0x50e   :  { %3345 = vmatpush3.bf16.msra.mxu1 %v3344_v60 }
 0x511   :  { %2873 = vmatmul.mubr.f32.vlgmr.msra.gmra.mrb[16].mxu1 %v1671_v61 }
 0x5c4   :  { %v1597_v15 = vpop.f32.mrb[14].mxu1 }
 0x5c5   :  { %v2804_v18 = vpop.f32.mrb[15].mxu1 }
 0x5cc   :  { %v1667_v19 = vpop.f32.mrb[16].mxu0 }
 0x5cd   :  { %v1668_v20 = vadd.f32 %v1667_v19, %v1597_v15  ;;  %v2839_v22 = vpop.f32.mrb[17].mxu0 }
 0x5e4   :  { %v1755_v17 = vpop.f32.mrb[16].mxu1 }
 0x5e5   :  { %v1759_v24 = vadd.f32 %v1755_v17, %v1668_v20  ;;  %v2874_v27 = vpop.f32.mrb[17].mxu1 }
 0x5e7   :  { %v1766_v28 = vadd.f32 %v2019_v23, %v1759_v24 }
 0x5e9   :  { %v1767_v29 = vmax.f32 %v1766_v28, 0.0 }
 0x5eb   :  { %2892 = vmatmul.mubr.msk.f32.vlgmr.msra.gmra.mrb[18].mxu0 %vm1410_vm1, %v1767_v29 }
 0x6be   :  { %v1845_v30 = vpop.f32.mrb[18].mxu0 }
 0x6bf   :  { %v1849_v32 = vadd.f32 %v1845_v30, %v4519_v3  ;;  %v2893_v35 = vpop.f32.mrb[19].mxu0 }
 0x6c1   :  { %v1857_v36 = vadd.f32 %v2021_v31, %v1849_v32 }
 0x6c3   :  { %v1858_v37 = vmax.f32 %v1857_v36, 0.0 }
 0x6c5   :  { %1859 = vst [vmem:[%s4629_s15] sm:$0xff] %v1858_v37 }

</bundles_post_ra>
